<compile_context>
chip_gen: v7x
topology: tpu7x:2x2x1
jax: 0.10.0
libtpu: 0.0.40
codegen_flags: <defaults>
</compile_context>

<pallas_src>
import functools

import jax
import jax.numpy as jnp
from jax.experimental import pallas as pl
from jax.experimental.pallas import tpu as pltpu


def _round_up(x, m):
    return (x + m - 1) // m * m


def _mlp_kernel(x_ref, w1_ref, b1_ref, w2_ref, b2_ref, o_ref, h_ref):
    # First linear + bias + ReLU: computed once per M tile (j == 0), reused for
    # every N tile of the second matmul. Accumulate in f32, store h in the
    # matmul operand dtype.
    @pl.when(pl.program_id(1) == 0)
    def _():
        h = jnp.dot(x_ref[...], w1_ref[...], preferred_element_type=jnp.float32)
        h = jnp.maximum(h + b1_ref[...], 0.0)          # bias + ReLU in f32
        h_ref[...] = h.astype(h_ref.dtype)

    # Second linear (per N tile).
    y = jnp.dot(h_ref[...], w2_ref[...], preferred_element_type=jnp.float32)
    o_ref[...] = (y + b2_ref[...]).astype(o_ref.dtype)


@functools.partial(jax.jit, static_argnames=("tile_m", "tile_n", "compute_dtype"))
def projector_mlp(x, w1, b1, w2, b2, *, tile_m=256, tile_n=None,
                  compute_dtype=jnp.bfloat16):
    """x: [B, D_in], w1: [D_in, H], b1: [H], w2: [H, D_out], b2: [D_out]."""
    out_dtype = x.dtype
    B, D_in = x.shape
    Dw, H = w1.shape
    H2, D_out = w2.shape
    assert Dw == D_in and H2 == H, "weight shapes inconsistent with input"
    assert tile_m % 8 == 0, "tile_m must be a multiple of 8"

    # N tiling (second matmul output columns). Default: full D_out (no tiling).
    tn = D_out if tile_n is None else tile_n
    assert D_out % tn == 0, "D_out must be divisible by tile_n"
    if tn != D_out:
        assert tn % 128 == 0, "tile_n must be a multiple of 128"
    n_tiled = tn != D_out

    # M tiling: don't use a tile larger than the (8-rounded) batch.
    tm = min(tile_m, _round_up(B, 8))
    B_pad = _round_up(B, tm)

    # Cast matmul operands; keep biases (and all elementwise math) in f32.
    xc = x.astype(compute_dtype)
    if B_pad != B:
        xc = jnp.pad(xc, ((0, B_pad - B), (0, 0)))
    w1c = w1.astype(compute_dtype)
    w2c = w2.astype(compute_dtype)
    b1f = b1.astype(jnp.float32).reshape(1, H)
    b2f = b2.astype(jnp.float32).reshape(1, D_out)

    cbytes = jnp.dtype(compute_dtype).itemsize
    obytes = jnp.dtype(out_dtype).itemsize

    # Explicit VMEM budget: x/out tiles double-buffered, resident weights
    # single-buffered, W2/b2 double-buffered only when streamed over N,
    # plus the h scratch; clamp to 64 MiB (v7x physical VMEM).
    needed = (2 * tm * D_in * cbytes                       # x tile
              + 2 * tm * tn * obytes                       # out tile
              + D_in * H * cbytes + H * 4                  # W1 + b1 (resident)
              + (2 if n_tiled else 1) * (H * tn * cbytes + tn * 4)  # W2 + b2
              + tm * H * cbytes)                           # h scratch
    vmem_limit = min(max(int(needed * 1.25) + (2 << 20), 16 << 20), 64 << 20)

    resident = pl.Buffered(1)             # constant index_map -> no double buffer
    w2_mode = None if n_tiled else resident

    grid = (B_pad // tm, D_out // tn)

    flops = 2 * B_pad * D_in * H + 2 * B_pad * H * D_out
    bytes_accessed = (B_pad * D_in * cbytes + D_in * H * cbytes + H * 4
                      + H * D_out * cbytes + D_out * 4 + B_pad * D_out * obytes)

    out = pl.pallas_call(
        _mlp_kernel,
        out_shape=jax.ShapeDtypeStruct((B_pad, D_out), out_dtype),
        grid_spec=pltpu.PrefetchScalarGridSpec(
            num_scalar_prefetch=0,
            grid=grid,
            in_specs=[
                pl.BlockSpec((tm, D_in), lambda i, j: (i, 0)),              # x tile
                pl.BlockSpec((D_in, H), lambda i, j: (0, 0),
                             pipeline_mode=resident),                        # W1
                pl.BlockSpec((1, H), lambda i, j: (0, 0),
                             pipeline_mode=resident),                        # b1
                pl.BlockSpec((H, tn), lambda i, j: (0, j),
                             pipeline_mode=w2_mode),                         # W2
                pl.BlockSpec((1, tn), lambda i, j: (0, j),
                             pipeline_mode=w2_mode),                         # b2
            ],
            out_specs=pl.BlockSpec((tm, tn), lambda i, j: (i, j)),
            scratch_shapes=[pltpu.VMEM((tm, H), compute_dtype)],             # h
        ),
        compiler_params=pltpu.CompilerParams(
            dimension_semantics=("parallel", "arbitrary"),
            vmem_limit_bytes=vmem_limit,
        ),
        cost_estimate=pl.CostEstimate(
            flops=flops, transcendentals=0, bytes_accessed=bytes_accessed),
    )(xc, w1c, b1f, w2c, b2f)

    return out[:B] if B_pad != B else out


def init_params(key, input_dim, output_dim, dtype=jnp.float32):
    """Deterministic nn.Linear-style init (uniform +/- 1/sqrt(fan_in))."""
    k1, k2, k3, k4 = jax.random.split(key, 4)
    lim1 = 1.0 / (input_dim ** 0.5)
    lim2 = 1.0 / (output_dim ** 0.5)
    w1 = jax.random.uniform(k1, (input_dim, output_dim), dtype, -lim1, lim1)
    b1 = jax.random.uniform(k2, (output_dim,), dtype, -lim1, lim1)
    w2 = jax.random.uniform(k3, (output_dim, output_dim), dtype, -lim2, lim2)
    b2 = jax.random.uniform(k4, (output_dim,), dtype, -lim2, lim2)
    return w1, b1, w2, b2


if __name__ == "__main__":
    # Small shapes consistent with ProjectorMLP(input_dim, output_dim):
    # batch=512 (so the parallel M axis has >= 2 grid points with tile_m=256),
    # input_dim=256, output_dim=512 — all (8,128)-friendly.
    B, D_IN, D_OUT = 512, 256, 512

    key = jax.random.PRNGKey(0)
    kx, kp = jax.random.split(key)
    x = jax.random.normal(kx, (B, D_IN), dtype=jnp.float32)
    w1, b1, w2, b2 = init_params(kp, D_IN, D_OUT)

    ref = jnp.maximum(x @ w1 + b1, 0.0) @ w2 + b2

    # Default path: bf16 matmul operands, f32 accumulation, 256-row MXU tiles.
    out = projector_mlp(x, w1, b1, w2, b2)
    out = jax.block_until_ready(out)
    assert out.shape == (B, D_OUT) and out.dtype == x.dtype
    assert jnp.allclose(out, ref, atol=3e-2, rtol=3e-2), "bf16 path mismatch"

    # f32 path, also exercising the N-tiled (tile_n) + h-reuse branch.
    out32 = projector_mlp(x, w1, b1, w2, b2, tile_m=128, tile_n=256,
                          compute_dtype=jnp.float32)
    out32 = jax.block_until_ready(out32)
    assert jnp.allclose(out32, ref, atol=2e-2, rtol=2e-2), "f32 path mismatch"

    print("KERNEL_OK")
</pallas_src>

<mosaic_0001>
module attributes {stable_mosaic.version = 11 : i64} {
  func.func @_mlp_kernel(%arg0: i32, %arg1: i32, %arg2: memref<256x256xbf16, #tpu.memory_space<vmem>>, %arg3: memref<256x512xbf16, #tpu.memory_space<vmem>>, %arg4: memref<1x512xf32, #tpu.memory_space<vmem>>, %arg5: memref<512x512xbf16, #tpu.memory_space<vmem>>, %arg6: memref<1x512xf32, #tpu.memory_space<vmem>>, %arg7: memref<256x512xf32, #tpu.memory_space<vmem>>, %arg8: memref<256x512xbf16, #tpu.memory_space<vmem>>) attributes {dimension_semantics = [#tpu.dimension_semantics<parallel>, #tpu.dimension_semantics<arbitrary>], iteration_bounds = array<i64: 2, 1>, scalar_prefetch = 0 : i64, scratch_operands = 1 : i64, tpu.core_type = #tpu.core_type<tc>, window_params = [{transform_indices = @transform_0, window_bounds = array<i64: 256, 256>}, {pipeline_mode = #tpu.pipeline_mode<synchronous>, transform_indices = @transform_1, window_bounds = array<i64: 256, 512>}, {pipeline_mode = #tpu.pipeline_mode<synchronous>, transform_indices = @transform_2, window_bounds = array<i64: 1, 512>}, {pipeline_mode = #tpu.pipeline_mode<synchronous>, transform_indices = @transform_3, window_bounds = array<i64: 512, 512>}, {pipeline_mode = #tpu.pipeline_mode<synchronous>, transform_indices = @transform_4, window_bounds = array<i64: 1, 512>}, {transform_indices = @transform_5, window_bounds = array<i64: 256, 512>}]} {
    %c0_i32 = arith.constant 0 : i32
    %0 = arith.cmpi eq, %arg1, %c0_i32 : i32
    %1 = arith.extui %0 : i1 to i32
    %c0_i32_0 = arith.constant 0 : i32
    %2 = arith.cmpi ne, %1, %c0_i32_0 : i32
    scf.if %2 {
      %c0_8 = arith.constant 0 : index
      %c0_9 = arith.constant 0 : index
      %10 = vector.load %arg2[%c0_8, %c0_9] : memref<256x256xbf16, #tpu.memory_space<vmem>>, vector<256x256xbf16>
      %c0_10 = arith.constant 0 : index
      %c0_11 = arith.constant 0 : index
      %11 = vector.load %arg3[%c0_10, %c0_11] : memref<256x512xbf16, #tpu.memory_space<vmem>>, vector<256x512xbf16>
      %cst_12 = arith.constant dense<0.000000e+00> : vector<256x512xf32>
      %12 = tpu.matmul %10, %11, %cst_12 {dimension_numbers = #tpu.dot_dimension_numbers<[1], [0], [0], [1], [0, 0, 1, 1], [], []>} : vector<256x256xbf16>, vector<256x512xbf16>, vector<256x512xf32> -> vector<256x512xf32>
      %c0_13 = arith.constant 0 : index
      %c0_14 = arith.constant 0 : index
      %13 = vector.load %arg4[%c0_13, %c0_14] : memref<1x512xf32, #tpu.memory_space<vmem>>, vector<1x512xf32>
      %14 = vector.broadcast %13 : vector<1x512xf32> to vector<256x512xf32>
      %15 = arith.addf %12, %14 : vector<256x512xf32>
      %cst_15 = arith.constant 0.000000e+00 : f32
      %16 = vector.broadcast %cst_15 : f32 to vector<256x512xf32>
      %17 = arith.maximumf %15, %16 : vector<256x512xf32>
      %18 = arith.truncf %17 : vector<256x512xf32> to vector<256x512xbf16>
      %c0_16 = arith.constant 0 : index
      %c0_17 = arith.constant 0 : index
      %19 = vector.load %arg8[%c0_16, %c0_17] : memref<256x512xbf16, #tpu.memory_space<vmem>>, vector<256x512xbf16>
      tpu.vector_store %arg8[%c0_16, %c0_17], %18 {strides = array<i32>} : memref<256x512xbf16, #tpu.memory_space<vmem>>, vector<256x512xbf16>,
    } else {
    }
    %c0 = arith.constant 0 : index
    %c0_1 = arith.constant 0 : index
    %3 = vector.load %arg8[%c0, %c0_1] : memref<256x512xbf16, #tpu.memory_space<vmem>>, vector<256x512xbf16>
    %c0_2 = arith.constant 0 : index
    %c0_3 = arith.constant 0 : index
    %4 = vector.load %arg5[%c0_2, %c0_3] : memref<512x512xbf16, #tpu.memory_space<vmem>>, vector<512x512xbf16>
    %cst = arith.constant dense<0.000000e+00> : vector<256x512xf32>
    %5 = tpu.matmul %3, %4, %cst {dimension_numbers = #tpu.dot_dimension_numbers<[1], [0], [0], [1], [0, 0, 1, 1], [], []>} : vector<256x512xbf16>, vector<512x512xbf16>, vector<256x512xf32> -> vector<256x512xf32>
    %c0_4 = arith.constant 0 : index
    %c0_5 = arith.constant 0 : index
    %6 = vector.load %arg6[%c0_4, %c0_5] : memref<1x512xf32, #tpu.memory_space<vmem>>, vector<1x512xf32>
    %7 = vector.broadcast %6 : vector<1x512xf32> to vector<256x512xf32>
    %8 = arith.addf %5, %7 : vector<256x512xf32>
    %c0_6 = arith.constant 0 : index
    %c0_7 = arith.constant 0 : index
    %9 = vector.load %arg7[%c0_6, %c0_7] : memref<256x512xf32, #tpu.memory_space<vmem>>, vector<256x512xf32>
    tpu.vector_store %arg7[%c0_6, %c0_7], %8 {strides = array<i32>} : memref<256x512xf32, #tpu.memory_space<vmem>>, vector<256x512xf32>,
    return
  }
  func.func @transform_0(%arg0: i32, %arg1: i32) -> (i32, i32) {
    %c0_i32 = arith.constant 0 : i32
    %c0_i32_0 = arith.constant 0 : i32
    return %arg0, %c0_i32 : i32, i32
  }
  func.func @transform_1(%arg0: i32, %arg1: i32) -> (i32, i32) {
    %c0_i32 = arith.constant 0 : i32
    %c0_i32_0 = arith.constant 0 : i32
    %c0_i32_1 = arith.constant 0 : i32
    return %c0_i32, %c0_i32_0 : i32, i32
  }
  func.func @transform_2(%arg0: i32, %arg1: i32) -> (i32, i32) {
    %c0_i32 = arith.constant 0 : i32
    %c0_i32_0 = arith.constant 0 : i32
    %c0_i32_1 = arith.constant 0 : i32
    return %c0_i32, %c0_i32_0 : i32, i32
  }
  func.func @transform_3(%arg0: i32, %arg1: i32) -> (i32, i32) {
    %c0_i32 = arith.constant 0 : i32
    %c0_i32_0 = arith.constant 0 : i32
    return %c0_i32, %arg1 : i32, i32
  }
  func.func @transform_4(%arg0: i32, %arg1: i32) -> (i32, i32) {
    %c0_i32 = arith.constant 0 : i32
    %c0_i32_0 = arith.constant 0 : i32
    return %c0_i32, %arg1 : i32, i32
  }
  func.func @transform_5(%arg0: i32, %arg1: i32) -> (i32, i32) {
    %c0_i32 = arith.constant 0 : i32
    return %arg0, %arg1 : i32, i32
  }
}

</mosaic_0001>

<bundles_post_ra>
// kernel: projector_mlp.1
= control target key start
LH: loop header
LB: loop body
LE: loop exit
PB: predicated region body
PF: predicated region fallthrough
CT: control target
= control target key end

     0   :  { %10 = vsyncpa [#allocation4], 0  ;;  %s5747_s0 = inlined_call_operand.vmem [shape: bf16[512,256], index: 0, kind: input, shape index: {}]   ;;  %s5748_s1 = inlined_call_operand.vmem [shape: bf16[256,512], index: 1, kind: input, shape index: {}]   ;;  %s5749_s2 = inlined_call_operand.vmem [shape: f32[1,512], index: 2, kind: input, shape index: {}]   ;;  %s5750_s3 = inlined_call_operand.vmem [shape: bf16[512,512], index: 3, kind: input, shape index: {}]   ;;  %s5751_s4 = inlined_call_operand.vmem [shape: f32[1,512], index: 4, kind: input, shape index: {}]   ;;  %s5752_s5 = inlined_call_operand.hbm [shape: f32[512,512], index: 5, kind: output, shape index: {}]  }
   0x1   :  { %12 = vsyncpa [#allocation4 + $0x1], 0  ;;  %s4406_s18 = smov 0   ;;  %s4408_s19 = smov 0  }
   0x2   :  { %s4410_s20 = smov 0   ;;  %s4412_s21 = smov 0  }
   0x3   :  { %s4414_s22 = smov 0   ;;  %s4416_s23 = smov 0  }
   0x4 LB: > { %s3400_s24 = sadd.s32 4294967295, %s4371_s23   ;;  %s3401_s25 = sadd.s32 4294967294, %s4371_s23   ;;  %s4371_s23 = sphi %s4416_s23, %s18_s23   ;;  %s4367_s22 = sphi %s4414_s22, %s5759_s22   ;;  %s4363_s21 = sphi %s4412_s21, %s5758_s21   ;;  %s4359_s20 = sphi %s4410_s20, %s5757_s20   ;;  %s4355_s19 = sphi %s4408_s19, %s5756_s19   ;;  %s4351_s18 = sphi %s4406_s18, %s5755_s18  }
   0x5   : > { %s30_s26 = sadd.s32 1, %s4367_s22  ;;  %s159_s27 = sadd.s32 1, %s4359_s20 }
   0x6   : > { %p32_p0 = scmp.ge.s32.totalorder %s30_s26, 2  ;;  %p169_p1 = scmp.ne.s32.totalorder %s4359_s20, %s4355_s19 }
   0x7   : > { %p170_p2 = scmp.eq.s32.totalorder %s3400_s24, 1  ;;  %p175_p3 = scmp.ne.s32.totalorder %s4355_s19, %s4351_s18 }
   0x8   : > { %s5761_s26 = smov (%p32_p0, %s30_s26), 0  ;;  %p176_p5 = scmp.eq.s32.totalorder %s3401_s25, 1 }
   0x9   : > { %p4446_p4 = por %p170_p2, %p169_p1  ;;  %s154_s29 = ssub.s32 %s4367_s22, %s5761_s26 }
   0xa   : > { %p3406_p6 = scmp.ge.s32.totalorder %s4371_s23, 1  ;;  %p157_p7 = scmp.eq.s32.totalorder %s154_s29, 0 }
   0xb   : > { %p4453_p8 = por %p176_p5, %p175_p3  ;;  %p227_p9 = scmp.lt.s32.totalorder %s4371_s23, 3 }
   0xc   : > { %s4459_s6 = scalar_select %p157_p7, %s4359_s20, %s159_s27  }
   0xd   : > { %p228_p10 = pnand %p3406_p6, %p227_p9 }
   0xe   : > { %v3957_v0 = vld [vmem:[%s5748_s1 + $0x4] ss:$16 sps:$4 sm:$0xff] (!%p228_p10)   ;;  %v3959_v1 = vld [vmem:[%s5748_s1] ss:$16 sps:$4 sm:$0xff] (!%p228_p10)   ;;  %s3408_s17 = sshll.u32 (!%p228_p10), %s4363_s21, 5  ;;  %s3643_s14 = sshll.u32 (!%p228_p10), %s4363_s21, 14 }
   0xf   : > { %231 = sbr.rel (%p228_p10) target bundleno = 781 (0x30d), region = 40  ;;  %887 = vmatprep.subr.bf16.mxu0 (!%p228_p10), %v3957_v0  ;;  %v3960_v2 = vld [vmem:[%s5748_s1 + $0x24] ss:$16 sps:$4 sm:$0xff] (!%p228_p10)   ;;  %v3962_v3 = vld [vmem:[%s5748_s1 + $0x20] ss:$16 sps:$4 sm:$0xff] (!%p228_p10)   ;;  %p266_p11 = scmp.lt.s32.totalorder (!%p228_p10), %s3408_s17, 63 }
  0x10   : > { %888 = vmatpush1.bf16.msra.mxu0 (!%p228_p10), %v3959_v1  ;;  %v3963_v4 = vld [vmem:[%s5748_s1 + $0x44] ss:$16 sps:$4 sm:$0xff] (!%p228_p10)   ;;  %v3965_v5 = vld [vmem:[%s5748_s1 + $0x40] ss:$16 sps:$4 sm:$0xff] (!%p228_p10)   ;;  %v4017_v17 = vld [vmem:[%s5748_s1 + $0xc] ss:$16 sps:$4 sm:$0xff] (!%p228_p10)   ;;  %s5687_s24 = scalar_lea.hbm (!%p228_p10), %s5752_s5, %s3643_s14 }
  0x11   : > { %889 = vmatprep.subr.bf16.mxu0 (!%p228_p10), %v3960_v2  ;;  %v3966_v6 = vld [vmem:[%s5748_s1 + $0x64] ss:$16 sps:$4 sm:$0xff] (!%p228_p10)   ;;  %v3968_v7 = vld [vmem:[%s5748_s1 + $0x60] ss:$16 sps:$4 sm:$0xff] (!%p228_p10)   ;;  %v4019_v18 = vld [vmem:[%s5748_s1 + $0x8] ss:$16 sps:$4 sm:$0xff] (!%p228_p10)   ;;  %1080 = vmatprep.subr.bf16.mxu1 (!%p228_p10), %v4017_v17 }
  0x12   : > { %v3969_v8 = vld [vmem:[%s5748_s1 + $0x84] ss:$16 sps:$4 sm:$0xff] (!%p228_p10)   ;;  %v3971_v9 = vld [vmem:[%s5748_s1 + $0x80] ss:$16 sps:$4 sm:$0xff] (!%p228_p10)   ;;  %v4022_v20 = vld [vmem:[%s5748_s1 + $0x2c] ss:$16 sps:$4 sm:$0xff] (!%p228_p10)   ;;  %1081 = vmatpush1.bf16.msra.mxu1 (!%p228_p10), %v4019_v18 }
  0x13   : > { %v3972_v10 = vld [vmem:[%s5748_s1 + $0xa4] ss:$16 sps:$4 sm:$0xff] (!%p228_p10)   ;;  %v3974_v11 = vld [vmem:[%s5748_s1 + $0xa0] ss:$16 sps:$4 sm:$0xff] (!%p228_p10)   ;;  %v4025_v21 = vld [vmem:[%s5748_s1 + $0x28] ss:$16 sps:$4 sm:$0xff] (!%p228_p10)   ;;  %1082 = vmatprep.subr.bf16.mxu1 (!%p228_p10), %v4022_v20 }
  0x14   : > { %890 = vmatpush1.bf16.msra.mxu0 (!%p228_p10), %v3962_v3  ;;  %v3975_v12 = vld [vmem:[%s5748_s1 + $0xc4] ss:$16 sps:$4 sm:$0xff] (!%p228_p10)   ;;  %v3977_v14 = vld [vmem:[%s5748_s1 + $0xc0] ss:$16 sps:$4 sm:$0xff] (!%p228_p10)   ;;  %v4026_v23 = vld [vmem:[%s5748_s1 + $0x4c] ss:$16 sps:$4 sm:$0xff] (!%p228_p10)  }
  0x15   : > { %891 = vmatprep.subr.bf16.mxu0 (!%p228_p10), %v3963_v4  ;;  %v3978_v15 = vld [vmem:[%s5748_s1 + $0xe4] ss:$16 sps:$4 sm:$0xff] (!%p228_p10)   ;;  %v3980_v16 = vld [vmem:[%s5748_s1 + $0xe0] ss:$16 sps:$4 sm:$0xff] (!%p228_p10)   ;;  %v4028_v25 = vld [vmem:[%s5748_s1 + $0x48] ss:$16 sps:$4 sm:$0xff] (!%p228_p10)  }
  0x16   : > { %s5763_s17 = smov (!%p266_p11, %s3408_s17), 63  ;;  %v3981_v19 = vld [vmem:[%s5748_s1 + $0x104] ss:$16 sps:$4 sm:$0xff]   ;;  %v3983_v22 = vld [vmem:[%s5748_s1 + $0x100] ss:$16 sps:$4 sm:$0xff]   ;;  %1083 = vmatpush1.bf16.msra.mxu1 %v4025_v21 }
  0x17   : > { %s3641_s15 = sshll.u32 %s5763_s17, 3  ;;  %v3984_v24 = vld [vmem:[%s5748_s1 + $0x124] ss:$16 sps:$4 sm:$0xff]   ;;  %v3986_v26 = vld [vmem:[%s5748_s1 + $0x120] ss:$16 sps:$4 sm:$0xff]   ;;  %1084 = vmatprep.subr.bf16.mxu1 %v4026_v23  ;;  %s262_s17 = sand.u32 1, %s4355_s19  }
  0x18   : > { %892 = vmatpush1.bf16.msra.mxu0 %v3965_v5  ;;  %s4501_s29 = scalar_lea.vmem %s5747_s0, %s3641_s15  ;;  %v4031_v27 = vld [vmem:[%s5748_s1 + $0x6c] ss:$16 sps:$4 sm:$0xff]   ;;  %v3987_v28 = vld [vmem:[%s5748_s1 + $0x144] ss:$16 sps:$4 sm:$0xff]   ;;  %v4034_v29 = vld [vmem:[%s5748_s1 + $0x68] ss:$16 sps:$4 sm:$0xff]  }
  0x19   : > { %893 = vmatprep.subr.bf16.mxu0 %v3966_v6  ;;  %v4007_v13 = vld [vmem:[%s4501_s29 + $0x4] ss:$8 sps:$4 sm:$0xff]   ;;  %v3989_v30 = vld [vmem:[%s5748_s1 + $0x140] ss:$16 sps:$4 sm:$0xff]   ;;  %v4037_v33 = vld [vmem:[%s5748_s1 + $0x88] ss:$16 sps:$4 sm:$0xff]  }
  0x1a   : > { %919 = vmatprep.mubr.bf16.mxu0 %v4007_v13  ;;  %1112 = vmatprep.mubr.bf16.mxu1 %v4007_v13  ;;  %v4035_v31 = vld [vmem:[%s5748_s1 + $0x8c] ss:$16 sps:$4 sm:$0xff]   ;;  %v3990_v32 = vld [vmem:[%s5748_s1 + $0x164] ss:$16 sps:$4 sm:$0xff]   ;;  %v3992_v34 = vld [vmem:[%s5748_s1 + $0x160] ss:$16 sps:$4 sm:$0xff]  }
  0x1b   : > { %1085 = vmatpush1.bf16.msra.mxu1 %v4028_v25  ;;  %v4040_v35 = vld [vmem:[%s5748_s1 + $0xac] ss:$16 sps:$4 sm:$0xff]   ;;  %v3993_v36 = vld [vmem:[%s5748_s1 + $0x184] ss:$16 sps:$4 sm:$0xff]   ;;  %v4043_v37 = vld [vmem:[%s5748_s1 + $0xa8] ss:$16 sps:$4 sm:$0xff]  }
  0x1c   : > { %894 = vmatpush1.bf16.msra.mxu0 %v3968_v7  ;;  %1086 = vmatprep.subr.bf16.mxu1 %v4031_v27  ;;  %v3995_v38 = vld [vmem:[%s5748_s1 + $0x180] ss:$16 sps:$4 sm:$0xff]   ;;  %v4044_v39 = vld [vmem:[%s5748_s1 + $0xcc] ss:$16 sps:$4 sm:$0xff]   ;;  %v3996_v40 = vld [vmem:[%s5748_s1 + $0x1a4] ss:$16 sps:$4 sm:$0xff]  }
  0x1d   : > { %895 = vmatprep.subr.bf16.mxu0 %v3969_v8  ;;  %v4046_v41 = vld [vmem:[%s5748_s1 + $0xc8] ss:$16 sps:$4 sm:$0xff]   ;;  %v3998_v42 = vld [vmem:[%s5748_s1 + $0x1a0] ss:$16 sps:$4 sm:$0xff]   ;;  %v4049_v43 = vld [vmem:[%s5748_s1 + $0xec] ss:$16 sps:$4 sm:$0xff]  }
  0x1e   : > { %v3999_v44 = vld [vmem:[%s5748_s1 + $0x1c4] ss:$16 sps:$4 sm:$0xff]   ;;  %v4052_v45 = vld [vmem:[%s5748_s1 + $0xe8] ss:$16 sps:$4 sm:$0xff]   ;;  %v4001_v46 = vld [vmem:[%s5748_s1 + $0x1c0] ss:$16 sps:$4 sm:$0xff]  }
  0x1f   : > { %1087 = vmatpush1.bf16.msra.mxu1 %v4034_v29  ;;  %v4053_v47 = vld [vmem:[%s5748_s1 + $0x10c] ss:$16 sps:$4 sm:$0xff]   ;;  %v4002_v48 = vld [vmem:[%s5748_s1 + $0x1e4] ss:$16 sps:$4 sm:$0xff]   ;;  %v4055_v49 = vld [vmem:[%s5748_s1 + $0x108] ss:$16 sps:$4 sm:$0xff]  }
  0x20   : > { %896 = vmatpush1.bf16.msra.mxu0 %v3971_v9  ;;  %1088 = vmatprep.subr.bf16.mxu1 %v4035_v31  ;;  %v4004_v50 = vld [vmem:[%s5748_s1 + $0x1e0] ss:$16 sps:$4 sm:$0xff]   ;;  %v4058_v51 = vld [vmem:[%s5748_s1 + $0x12c] ss:$16 sps:$4 sm:$0xff]   ;;  %v4091_v52 = vld [vmem:[%s5750_s3 + $0x4] ss:$16 sps:$4 sm:$0xff]  }
  0x21   : > { %897 = vmatprep.subr.bf16.mxu0 %v3972_v10  ;;  %v4625_v53 = vld [vmem:[%s4501_s29] ss:$8 sps:$4 sm:$0xff]   ;;  %v4631_v55 = vld [vmem:[%s4501_s29 + $0x14] ss:$8 sps:$4 sm:$0xff]   ;;  %v4657_v63 = vld [vmem:[%s4501_s29 + $0x10] ss:$8 sps:$4 sm:$0xff]  }
  0x22   : > { %v4061_v54 = vld [vmem:[%s5748_s1 + $0x128] ss:$16 sps:$4 sm:$0xff]   ;;  %v4062_v56 = vld [vmem:[%s5748_s1 + $0x14c] ss:$16 sps:$4 sm:$0xff]   ;;  %v4089_v57 = vld [vmem:[%s5750_s3] ss:$16 sps:$4 sm:$0xff]  }
  0x23   : > { %1089 = vmatpush1.bf16.msra.mxu1 %v4037_v33  ;;  %v4100_v58 = vld [vmem:[%s5750_s3 + $0x24] ss:$16 sps:$4 sm:$0xff]   ;;  %v4064_v59 = vld [vmem:[%s5748_s1 + $0x148] ss:$16 sps:$4 sm:$0xff]   ;;  %v4067_v60 = vld [vmem:[%s5748_s1 + $0x16c] ss:$16 sps:$4 sm:$0xff]  }
  0x24   : > { %898 = vmatpush1.bf16.msra.mxu0 %v3974_v11  ;;  %1090 = vmatprep.subr.bf16.mxu1 %v4040_v35  ;;  %v4098_v61 = vld [vmem:[%s5750_s3 + $0x20] ss:$16 sps:$4 sm:$0xff]   ;;  %v4109_v62 = vld [vmem:[%s5750_s3 + $0x44] ss:$16 sps:$4 sm:$0xff]   ;;  %v4070_v0 = vld [vmem:[%s5748_s1 + $0x168] ss:$16 sps:$4 sm:$0xff]  }
  0x25   : > { %899 = vmatprep.subr.bf16.mxu0 %v3975_v12  ;;  %v4663_v1 = vld [vmem:[%s4501_s29 + $0x24] ss:$8 sps:$4 sm:$0xff]   ;;  %v4107_v3 = vld [vmem:[%s5750_s3 + $0x40] ss:$16 sps:$4 sm:$0xff]   ;;  %v4073_v5 = vld [vmem:[%s5748_s1 + $0x188] ss:$16 sps:$4 sm:$0xff]  }
  0x26   : > { %v4071_v2 = vld [vmem:[%s5748_s1 + $0x18c] ss:$16 sps:$4 sm:$0xff]   ;;  %v4118_v4 = vld [vmem:[%s5750_s3 + $0x64] ss:$16 sps:$4 sm:$0xff]   ;;  %v4116_v7 = vld [vmem:[%s5750_s3 + $0x60] ss:$16 sps:$4 sm:$0xff]  }
  0x27   : > { %1091 = vmatpush1.bf16.msra.mxu1 %v4043_v37  ;;  %v4076_v6 = vld [vmem:[%s5748_s1 + $0x1ac] ss:$16 sps:$4 sm:$0xff]   ;;  %v4127_v8 = vld [vmem:[%s5750_s3 + $0x84] ss:$16 sps:$4 sm:$0xff]   ;;  %v4689_v9 = vld [vmem:[%s4501_s29 + $0x20] ss:$8 sps:$4 sm:$0xff]  }
  0x28   : > { %900 = vmatpush1.bf16.msra.mxu0 %v3977_v14  ;;  %1092 = vmatprep.subr.bf16.mxu1 %v4044_v39  ;;  %v4079_v10 = vld [vmem:[%s5748_s1 + $0x1a8] ss:$16 sps:$4 sm:$0xff]   ;;  %v4695_v11 = vld [vmem:[%s4501_s29 + $0x34] ss:$8 sps:$4 sm:$0xff]   ;;  %v4125_v13 = vld [vmem:[%s5750_s3 + $0x80] ss:$16 sps:$4 sm:$0xff]  }
  0x29   : > { %901 = vmatprep.subr.bf16.mxu0 %v3978_v15  ;;  %v4080_v12 = vld [vmem:[%s5748_s1 + $0x1cc] ss:$16 sps:$4 sm:$0xff]   ;;  %v4133_v14 = vld [vmem:[%s5750_s3 + $0xa4] ss:$16 sps:$4 sm:$0xff]   ;;  %v4082_v15 = vld [vmem:[%s5748_s1 + $0x1c8] ss:$16 sps:$4 sm:$0xff]  }
  0x2a   : > { %v4131_v17 = vld [vmem:[%s5750_s3 + $0xa0] ss:$16 sps:$4 sm:$0xff]   ;;  %v4139_v18 = vld [vmem:[%s5750_s3 + $0xc4] ss:$16 sps:$4 sm:$0xff]   ;;  %v4088_v20 = vld [vmem:[%s5748_s1 + $0x1e8] ss:$16 sps:$4 sm:$0xff]  }
  0x2b   : > { %1093 = vmatpush1.bf16.msra.mxu1 %v4046_v41  ;;  %v4727_v21 = vld [vmem:[%s4501_s29 + $0x44] ss:$8 sps:$4 sm:$0xff]   ;;  %v4137_v23 = vld [vmem:[%s5750_s3 + $0xc0] ss:$16 sps:$4 sm:$0xff]   ;;  %v4092_v25 = vld [vmem:[%s5750_s3 + $0x8] ss:$16 sps:$4 sm:$0xff]  }
  0x2c   : > { %902 = vmatpush1.bf16.msra.mxu0 %v3980_v16  ;;  %1094 = vmatprep.subr.bf16.mxu1 %v4049_v43  ;;  %v4085_v16 = vld [vmem:[%s5748_s1 + $0x1ec] ss:$16 sps:$4 sm:$0xff]   ;;  %v4143_v27 = vld [vmem:[%s5750_s3 + $0xe0] ss:$16 sps:$4 sm:$0xff]   ;;  %v4110_v35 = vld [vmem:[%s5750_s3 + $0x48] ss:$16 sps:$4 sm:$0xff]  }
  0x2d   : > { %903 = vmatprep.subr.bf16.mxu0 %v3981_v19  ;;  %v4721_v19 = vld [vmem:[%s4501_s29 + $0x30] ss:$8 sps:$4 sm:$0xff]   ;;  %v4754_v29 = vld [vmem:[%s4501_s29 + $0x40] ss:$8 sps:$4 sm:$0xff]   ;;  %v4761_v31 = vld [vmem:[%s4501_s29 + $0x54] ss:$8 sps:$4 sm:$0xff]  }
  0x2e   : > { %v4149_v33 = vld [vmem:[%s5750_s3 + $0x100] ss:$16 sps:$4 sm:$0xff]   ;;  %v4163_v39 = vld [vmem:[%s5750_s3 + $0x144] ss:$16 sps:$4 sm:$0xff]   ;;  %v4119_v41 = vld [vmem:[%s5750_s3 + $0x68] ss:$16 sps:$4 sm:$0xff]  }
  0x2f   : > { %1095 = vmatpush1.bf16.msra.mxu1 %v4052_v45  ;;  %v4781_v37 = vld [vmem:[%s4501_s29 + $0x50] ss:$8 sps:$4 sm:$0xff]   ;;  %v4169_v45 = vld [vmem:[%s5750_s3 + $0x164] ss:$16 sps:$4 sm:$0xff]   ;;  %s3407_s12 = sshll.u32 %s262_s17, 10  ;;  %s5701_s25 = scalar_lea.sflag [#allocation4], %s262_s17 }
  0x30   : > { %904 = vmatpush1.bf16.msra.mxu0 %v3983_v22  ;;  %1096 = vmatprep.subr.bf16.mxu1 %v4053_v47  ;;  %v4094_v22 = vld [vmem:[%s5750_s3 + $0xc] ss:$16 sps:$4 sm:$0xff]   ;;  %v4161_v43 = vld [vmem:[%s5750_s3 + $0x140] ss:$16 sps:$4 sm:$0xff]   ;;  %s5436_s13 = scalar_lea.vmem [#allocation3], %s3407_s12 }
  0x31   : > { %905 = vmatprep.subr.bf16.mxu0 %v3984_v24  ;;  %v4145_v24 = vld [vmem:[%s5750_s3 + $0xe4] ss:$16 sps:$4 sm:$0xff]   ;;  %v4167_v47 = vld [vmem:[%s5750_s3 + $0x160] ss:$16 sps:$4 sm:$0xff]   ;;  %s3300_s15 = sshll.u32 %s5436_s13, 4  ;;  %s5689_s15 = int_to_ptr.vmem [resolvable:$true] %s3300_s15 }
  0x32   : > { %s4293_s27 = scalar_lea.vmem %s5689_s15, 16384 }
  0x33   : > { %1097 = vmatpush1.bf16.msra.mxu1 %v4055_v49  ;;  %v4821_v49 = vld [vmem:[%s4501_s29 + $0x60] ss:$8 sps:$4 sm:$0xff]   ;;  %p4294_p12 = scmp.ne.s32.totalorder %s5689_s15, %s4293_s27 }
  0x34   : > { %906 = vmatpush1.bf16.msra.mxu0 %v3986_v26  ;;  %1098 = vmatprep.subr.bf16.mxu1 %v4058_v51  ;;  %v4103_v26 = vld [vmem:[%s5750_s3 + $0x2c] ss:$16 sps:$4 sm:$0xff]  }
  0x35   : > { %907 = vmatprep.subr.bf16.mxu0 %v3987_v28  ;;  %v4151_v28 = vld [vmem:[%s5750_s3 + $0x104] ss:$16 sps:$4 sm:$0xff]   ;;  %p4295_p13 = pnand %p4294_p12, %p4446_p4 }
  0x36   : > { %v4827_v51 = vld [vmem:[%s4501_s29 + $0x74] ss:$8 sps:$4 sm:$0xff]  }
  0x37   : > { %1099 = vmatpush1.bf16.msra.mxu1 %v4061_v54  ;;  %v4181_v54 = vld [vmem:[%s5750_s3 + $0x1a4] ss:$16 sps:$4 sm:$0xff]   ;;  %p4296_p0 = pneg %p4295_p13 }
  0x38   : > { %908 = vmatpush1.bf16.msra.mxu0 %v3989_v30  ;;  %1100 = vmatprep.subr.bf16.mxu1 %v4062_v56  ;;  %v4101_v30 = vld [vmem:[%s5750_s3 + $0x28] ss:$16 sps:$4 sm:$0xff]   ;;  %v4148_v56 = vld [vmem:[%s5750_s3 + $0xec] ss:$16 sps:$4 sm:$0xff]  }
  0x39   : > { %909 = vmatprep.subr.bf16.mxu0 %v3990_v32  ;;  %v4112_v32 = vld [vmem:[%s5750_s3 + $0x4c] ss:$16 sps:$4 sm:$0xff]  }
  0x3b   : > { %1101 = vmatpush1.bf16.msra.mxu1 %v4064_v59  ;;  %v4051_v59 = vld [vmem:[%s4501_s29 + $0x70] ss:$8 sps:$4 sm:$0xff]  }
  0x3c   : > { %910 = vmatpush1.bf16.msra.mxu0 %v3992_v34  ;;  %1102 = vmatprep.subr.bf16.mxu1 %v4067_v60  ;;  %v4157_v34 = vld [vmem:[%s5750_s3 + $0x124] ss:$16 sps:$4 sm:$0xff]   ;;  %v4146_v60 = vld [vmem:[%s5750_s3 + $0xe8] ss:$16 sps:$4 sm:$0xff]  }
  0x3d   : > { %911 = vmatprep.subr.bf16.mxu0 %v3993_v36  ;;  %v4121_v36 = vld [vmem:[%s5750_s3 + $0x6c] ss:$16 sps:$4 sm:$0xff]  }
  0x3f   : > { %1103 = vmatpush1.bf16.msra.mxu1 %v4070_v0  ;;  %v4152_v0 = vld [vmem:[%s5750_s3 + $0x108] ss:$16 sps:$4 sm:$0xff]  }
  0x40   : > { %912 = vmatpush1.bf16.msra.mxu0 %v3995_v38  ;;  %1104 = vmatprep.subr.bf16.mxu1 %v4071_v2  ;;  %v4155_v38 = vld [vmem:[%s5750_s3 + $0x120] ss:$16 sps:$4 sm:$0xff]  }
  0x41   : > { %913 = vmatprep.subr.bf16.mxu0 %v3996_v40  ;;  %v4791_v40 = vld [vmem:[%s4501_s29 + $0x64] ss:$8 sps:$4 sm:$0xff]   ;;  %v4060_v2 = vld [vmem:[%s4501_s29 + $0x80] ss:$8 sps:$4 sm:$0xff]  }
  0x43   : > { %1105 = vmatpush1.bf16.msra.mxu1 %v4073_v5  ;;  %v4166_v5 = vld [vmem:[%s5750_s3 + $0x14c] ss:$16 sps:$4 sm:$0xff]  }
  0x44   : > { %914 = vmatpush1.bf16.msra.mxu0 %v3998_v42  ;;  %1106 = vmatprep.subr.bf16.mxu1 %v4076_v6  ;;  %v4130_v42 = vld [vmem:[%s5750_s3 + $0x8c] ss:$16 sps:$4 sm:$0xff]   ;;  %v4164_v6 = vld [vmem:[%s5750_s3 + $0x148] ss:$16 sps:$4 sm:$0xff]  }
  0x45   : > { %915 = vmatprep.subr.bf16.mxu0 %v3999_v44  ;;  %v4128_v44 = vld [vmem:[%s5750_s3 + $0x88] ss:$16 sps:$4 sm:$0xff]  }
  0x47   : > { %1107 = vmatpush1.bf16.msra.mxu1 %v4079_v10  ;;  %v4074_v10 = vld [vmem:[%s4501_s29 + $0xa4] ss:$8 sps:$4 sm:$0xff]  }
  0x48   : > { %916 = vmatpush1.bf16.msra.mxu0 %v4001_v46  ;;  %1108 = vmatprep.subr.bf16.mxu1 %v4080_v12  ;;  %v4136_v46 = vld [vmem:[%s5750_s3 + $0xac] ss:$16 sps:$4 sm:$0xff]   ;;  %v4176_v12 = vld [vmem:[%s5750_s3 + $0x188] ss:$16 sps:$4 sm:$0xff]  }
  0x49   : > { %917 = vmatprep.subr.bf16.mxu0 %v4002_v48  ;;  %v4175_v48 = vld [vmem:[%s5750_s3 + $0x184] ss:$16 sps:$4 sm:$0xff]  }
  0x4b   : > { %1109 = vmatpush1.bf16.msra.mxu1 %v4082_v15  ;;  %v4182_v15 = vld [vmem:[%s5750_s3 + $0x1a8] ss:$16 sps:$4 sm:$0xff]  }
  0x4c   : > { %918 = vmatpush1.bf16.msra.mxu0 %v4004_v50  ;;  %1110 = vmatprep.subr.bf16.mxu1 %v4085_v16  ;;  %v4134_v50 = vld [vmem:[%s5750_s3 + $0xa8] ss:$16 sps:$4 sm:$0xff]   ;;  %v4083_v16 = vld [vmem:[%s4501_s29 + $0xb4] ss:$8 sps:$4 sm:$0xff]  }
  0x4d   : > { %2383 = vmatprep.subr.bf16.mxu0 %v4091_v52  ;;  %v4142_v52 = vld [vmem:[%s5750_s3 + $0xcc] ss:$16 sps:$4 sm:$0xff]  }
  0x4f   : > { %920 = vmatmul.mubr.bf16.vlgmr.msra.gmra.mrb[0].mxu0 %v4625_v53  ;;  %1111 = vmatpush1.bf16.msra.mxu1 %v4088_v20  ;;  %v4095_v20 = vld [vmem:[%s4501_s29 + $0xc4] ss:$8 sps:$4 sm:$0xff]  }
  0x50   : > { %929 = vmatprep.mubr.bf16.mxu0 %v4631_v55  ;;  %2384 = vmatpush1.bf16.msra.mxu0 %v4089_v57  ;;  %v4179_v57 = vld [vmem:[%s5750_s3 + $0x1a0] ss:$16 sps:$4 sm:$0xff]  }
  0x51   : > { %2385 = vmatprep.subr.bf16.mxu0 %v4100_v58  ;;  %2769 = vmatprep.subr.bf16.mxu1 %v4094_v22  ;;  %v4187_v58 = vld [vmem:[%s5750_s3 + $0x1c4] ss:$16 sps:$4 sm:$0xff]   ;;  %v4196_v22 = vld [vmem:[%s5750_s3 + $0x1ec] ss:$16 sps:$4 sm:$0xff]  }
  0x52   : > { %1113 = vmatmul.mubr.bf16.vlgmr.msra.gmra.mrb[0].mxu1 %v4625_v53  ;;  %v4173_v53 = vld [vmem:[%s5750_s3 + $0x180] ss:$16 sps:$4 sm:$0xff]  }
  0x53   : > { %2770 = vmatpush1.bf16.msra.mxu1 %v4092_v25  ;;  %1122 = vmatprep.mubr.bf16.mxu1 %v4631_v55  ;;  %v4140_v55 = vld [vmem:[%s5750_s3 + $0xc8] ss:$16 sps:$4 sm:$0xff]  }
  0x54   : > { %2386 = vmatpush1.bf16.msra.mxu0 %v4098_v61  ;;  %2771 = vmatprep.subr.bf16.mxu1 %v4103_v26  ;;  %v4056_v61 = vld [vmem:[%s4501_s29 + $0x84] ss:$8 sps:$4 sm:$0xff]   ;;  %v4097_v25 = vld [vmem:[%s4501_s29 + $0xc0] ss:$8 sps:$4 sm:$0xff]   ;;  %v4104_v26 = vld [vmem:[%s4501_s29 + $0xd4] ss:$8 sps:$4 sm:$0xff]  }
  0x55   : > { %2387 = vmatprep.subr.bf16.mxu0 %v4109_v62  ;;  %v4154_v62 = vld [vmem:[%s5750_s3 + $0x10c] ss:$16 sps:$4 sm:$0xff]  }
  0x57   : > { %930 = vmatmul.mubr.bf16.gmra.mrb[4].mxu0 %v4657_v63  ;;  %2772 = vmatpush1.bf16.msra.mxu1 %v4101_v30  ;;  %v4113_v30 = vld [vmem:[%s4501_s29 + $0xe4] ss:$8 sps:$4 sm:$0xff]  }
  0x58   : > { %939 = vmatprep.mubr.bf16.mxu0 %v4663_v1  ;;  %2388 = vmatpush1.bf16.msra.mxu0 %v4107_v3  ;;  %v4158_v3 = vld [vmem:[%s5750_s3 + $0x128] ss:$16 sps:$4 sm:$0xff]  }
  0x59   : > { %2389 = vmatprep.subr.bf16.mxu0 %v4118_v4  ;;  %2773 = vmatprep.subr.bf16.mxu1 %v4112_v32  ;;  %v4065_v4 = vld [vmem:[%s4501_s29 + $0x94] ss:$8 sps:$4 sm:$0xff]  }
  0x5a   : > { %1123 = vmatmul.mubr.bf16.gmra.mrb[4].mxu1 %v4657_v63  ;;  %v4185_v63 = vld [vmem:[%s5750_s3 + $0x1c0] ss:$16 sps:$4 sm:$0xff]   ;;  %v4122_v32 = vld [vmem:[%s4501_s29 + $0xf4] ss:$8 sps:$4 sm:$0xff]  }
  0x5b   : > { %1132 = vmatprep.mubr.bf16.mxu1 %v4663_v1  ;;  %2774 = vmatpush1.bf16.msra.mxu1 %v4110_v35  ;;  %v4160_v1 = vld [vmem:[%s5750_s3 + $0x12c] ss:$16 sps:$4 sm:$0xff]  }
  0x5c   : > { %2390 = vmatpush1.bf16.msra.mxu0 %v4116_v7  ;;  %2775 = vmatprep.subr.bf16.mxu1 %v4121_v36  ;;  %v4172_v7 = vld [vmem:[%s5750_s3 + $0x16c] ss:$16 sps:$4 sm:$0xff]  }
  0x5d   : > { %2391 = vmatprep.subr.bf16.mxu0 %v4127_v8  ;;  %v4069_v8 = vld [vmem:[%s4501_s29 + $0x90] ss:$8 sps:$4 sm:$0xff]  }
  0x5f   : > { %940 = vmatmul.mubr.bf16.gmra.mrb[8].mxu0 %v4689_v9  ;;  %2776 = vmatpush1.bf16.msra.mxu1 %v4119_v41 }
  0x60   : > { %949 = vmatprep.mubr.bf16.mxu0 %v4695_v11  ;;  %2392 = vmatpush1.bf16.msra.mxu0 %v4125_v13  ;;  %v4184_v13 = vld [vmem:[%s5750_s3 + $0x1ac] ss:$16 sps:$4 sm:$0xff]  }
  0x61   : > { %2393 = vmatprep.subr.bf16.mxu0 %v4133_v14  ;;  %2777 = vmatprep.subr.bf16.mxu1 %v4130_v42  ;;  %v4078_v14 = vld [vmem:[%s4501_s29 + $0xa0] ss:$8 sps:$4 sm:$0xff]  }
  0x62   : > { %1133 = vmatmul.mubr.bf16.gmra.mrb[8].mxu1 %v4689_v9  ;;  %v4170_v9 = vld [vmem:[%s5750_s3 + $0x168] ss:$16 sps:$4 sm:$0xff]  }
  0x63   : > { %1142 = vmatprep.mubr.bf16.mxu1 %v4695_v11  ;;  %2778 = vmatpush1.bf16.msra.mxu1 %v4128_v44  ;;  %v4178_v11 = vld [vmem:[%s5750_s3 + $0x18c] ss:$16 sps:$4 sm:$0xff]  }
  0x64   : > { %2394 = vmatpush1.bf16.msra.mxu0 %v4131_v17  ;;  %2779 = vmatprep.subr.bf16.mxu1 %v4136_v46  ;;  %v4190_v17 = vld [vmem:[%s5750_s3 + $0x1cc] ss:$16 sps:$4 sm:$0xff]  }
  0x65   : > { %2395 = vmatprep.subr.bf16.mxu0 %v4139_v18  ;;  %v4188_v18 = vld [vmem:[%s5750_s3 + $0x1c8] ss:$16 sps:$4 sm:$0xff]  }
  0x67   : > { %950 = vmatmul.mubr.bf16.gmra.mrb[12].mxu0 %v4721_v19  ;;  %2780 = vmatpush1.bf16.msra.mxu1 %v4134_v50 }
  0x68   : > { %959 = vmatprep.mubr.bf16.mxu0 %v4727_v21  ;;  %2396 = vmatpush1.bf16.msra.mxu0 %v4137_v23  ;;  %v4191_v23 = vld [vmem:[%s5750_s3 + $0x1e0] ss:$16 sps:$4 sm:$0xff]  }
  0x69   : > { %2397 = vmatprep.subr.bf16.mxu0 %v4145_v24  ;;  %2781 = vmatprep.subr.bf16.mxu1 %v4142_v52  ;;  %v4194_v24 = vld [vmem:[%s5750_s3 + $0x1e8] ss:$16 sps:$4 sm:$0xff]  }
  0x6a   : > { %1143 = vmatmul.mubr.bf16.gmra.mrb[12].mxu1 %v4721_v19  ;;  %v4087_v19 = vld [vmem:[%s4501_s29 + $0xb0] ss:$8 sps:$4 sm:$0xff]  }
  0x6b   : > { %1152 = vmatprep.mubr.bf16.mxu1 %v4727_v21  ;;  %2782 = vmatpush1.bf16.msra.mxu1 %v4140_v55  ;;  %v4193_v21 = vld [vmem:[%s5750_s3 + $0x1e4] ss:$16 sps:$4 sm:$0xff]  }
  0x6c   : > { %2398 = vmatpush1.bf16.msra.mxu0 %v4143_v27  ;;  %2783 = vmatprep.subr.bf16.mxu1 %v4148_v56  ;;  %v4199_v27 = vld [vmem:[%s5750_s3 + $0x204] ss:$16 sps:$4 sm:$0xff]   ;;  %v4197_v56 = vld [vmem:[%s5750_s3 + $0x200] ss:$16 sps:$4 sm:$0xff]  }
  0x6d   : > { %2399 = vmatprep.subr.bf16.mxu0 %v4151_v28  ;;  %v4202_v28 = vld [vmem:[%s5750_s3 + $0x20c] ss:$16 sps:$4 sm:$0xff]  }
  0x6f   : > { %960 = vmatmul.mubr.bf16.gmra.mrb[16].mxu0 %v4754_v29  ;;  %2784 = vmatpush1.bf16.msra.mxu1 %v4146_v60  ;;  %v4205_v60 = vld [vmem:[%s5750_s3 + $0x224] ss:$16 sps:$4 sm:$0xff]  }
  0x70   : > { %969 = vmatprep.mubr.bf16.mxu0 %v4761_v31  ;;  %2400 = vmatpush1.bf16.msra.mxu0 %v4149_v33  ;;  %v4124_v33 = vld [vmem:[%s4501_s29 + $0xf0] ss:$8 sps:$4 sm:$0xff]  }
  0x71   : > { %2401 = vmatprep.subr.bf16.mxu0 %v4157_v34  ;;  %2785 = vmatprep.subr.bf16.mxu1 %v4154_v62  ;;  %v387_v34 = vlaneseq }
  0x72   : > { %1153 = vmatmul.mubr.bf16.gmra.mrb[16].mxu1 %v4754_v29  ;;  %v4106_v29 = vld [vmem:[%s4501_s29 + $0xd0] ss:$8 sps:$4 sm:$0xff]  }
  0x73   : > { %1162 = vmatprep.mubr.bf16.mxu1 %v4761_v31  ;;  %2786 = vmatpush1.bf16.msra.mxu1 %v4152_v0  ;;  %v4115_v31 = vld [vmem:[%s4501_s29 + $0xe0] ss:$8 sps:$4 sm:$0xff]   ;;  %v4945_v35 = vshrl.u32 %v387_v34, 7  ;;  %s4373_s29 = smov [#allocation3]  }
  0x74   : > { %2402 = vmatpush1.bf16.msra.mxu0 %v4155_v38  ;;  %2787 = vmatprep.subr.bf16.mxu1 %v4160_v1  ;;  %s4297_s7 = sshll.u32 %s4373_s29, 4  ;;  %s4298_s7 = int_to_ptr.vmem [resolvable:$false] %s4297_s7 }
  0x75   : > { %2403 = vmatprep.subr.bf16.mxu0 %v4163_v39  ;;  %v389_v36 = vsub.s32 0, %v4945_v35  ;;  %v393_v38 = vsub.s32 1, %v4945_v35  ;;  %s4299_s8 = scalar_lea.vmem %s4298_s7, 32768  ;;  %p4300_p1 = scmp.lt.s32.totalorder %s5689_s15, %s4298_s7 }
  0x76   : > { %p4301_p2 = scmp.lt.s32.totalorder %s4299_s8, %s4293_s27 }
  0x77   : > { %970 = vmatmul.mubr.bf16.gmra.mrb[20].mxu0 %v4781_v37  ;;  %2788 = vmatpush1.bf16.msra.mxu1 %v4158_v3  ;;  %v4203_v3 = vld [vmem:[%s5750_s3 + $0x220] ss:$16 sps:$4 sm:$0xff]  }
  0x78   : > { %979 = vmatprep.mubr.bf16.mxu0 %v4791_v40  ;;  %2404 = vmatpush1.bf16.msra.mxu0 %v4161_v43  ;;  %p4302_p3 = por %p4301_p2, %p4300_p1 }
  0x79   : > { %2405 = vmatprep.subr.bf16.mxu0 %v4169_v45  ;;  %2789 = vmatprep.subr.bf16.mxu1 %v4166_v5 }
  0x7a   : > { %1163 = vmatmul.mubr.bf16.gmra.mrb[20].mxu1 %v4781_v37  ;;  %v4951_v37 = vld [vmem:[%s5749_s2] sm:$0xf]  ;;  %p4303_p5 = pnand %p4302_p3, %p4296_p0 }
  0x7b   : > { %1172 = vmatprep.mubr.bf16.mxu1 %v4791_v40  ;;  %2790 = vmatpush1.bf16.msra.mxu1 %v4164_v6  ;;  %v4957_v39 = vrot.slane %v4951_v37, %v389_v36  ;;  %v4962_v40 = vrot.slane %v4951_v37, %v393_v38 }
  0x7c   : > { %2406 = vmatpush1.bf16.msra.mxu0 %v4167_v47  ;;  %2791 = vmatprep.subr.bf16.mxu1 %v4172_v7  ;;  %v4211_v7 = vld [vmem:[%s5750_s3 + $0x244] ss:$16 sps:$4 sm:$0xff]  }
  0x7d   : > { %2407 = vmatprep.subr.bf16.mxu0 %v4175_v48 }
  0x7f   : > { %980 = vmatmul.mubr.bf16.gmra.mrb[24].mxu0 %v4821_v49  ;;  %2792 = vmatpush1.bf16.msra.mxu1 %v4170_v9 }
  0x80   : > { %989 = vmatprep.mubr.bf16.mxu0 %v4827_v51  ;;  %2408 = vmatpush1.bf16.msra.mxu0 %v4173_v53 }
  0x81   : > { %2409 = vmatprep.subr.bf16.mxu0 %v4181_v54  ;;  %2793 = vmatprep.subr.bf16.mxu1 %v4178_v11 }
  0x82   : > { %1173 = vmatmul.mubr.bf16.gmra.mrb[24].mxu1 %v4821_v49 }
  0x83   : > { %1182 = vmatprep.mubr.bf16.mxu1 %v4827_v51  ;;  %2794 = vmatpush1.bf16.msra.mxu1 %v4176_v12 }
  0x84   : > { %2410 = vmatpush1.bf16.msra.mxu0 %v4179_v57  ;;  %2795 = vmatprep.subr.bf16.mxu1 %v4184_v13  ;;  %v4200_v57 = vld [vmem:[%s5750_s3 + $0x208] ss:$16 sps:$4 sm:$0xff]  }
  0x85   : > { %2411 = vmatprep.subr.bf16.mxu0 %v4187_v58 }
  0x87   : > { %990 = vmatmul.mubr.bf16.gmra.mrb[28].mxu0 %v4051_v59  ;;  %2796 = vmatpush1.bf16.msra.mxu1 %v4182_v15  ;;  %v4212_v15 = vld [vmem:[%s5750_s3 + $0x248] ss:$16 sps:$4 sm:$0xff]  }
  0x88   : > { %999 = vmatprep.mubr.bf16.mxu0 %v4056_v61  ;;  %2412 = vmatpush1.bf16.msra.mxu0 %v4185_v63 }
  0x89   : > { %2797 = vmatprep.subr.bf16.mxu1 %v4190_v17  ;;  %2413 = vmatprep.subr.bf16.mxu0 %v4193_v21 }
  0x8a   : > { %1183 = vmatmul.mubr.bf16.gmra.mrb[28].mxu1 %v4051_v59 }
  0x8b   : > { %1192 = vmatprep.mubr.bf16.mxu1 %v4056_v61  ;;  %2798 = vmatpush1.bf16.msra.mxu1 %v4188_v18  ;;  %v4208_v61 = vld [vmem:[%s5750_s3 + $0x22c] ss:$16 sps:$4 sm:$0xff]   ;;  %v4217_v18 = vld [vmem:[%s5750_s3 + $0x264] ss:$16 sps:$4 sm:$0xff]  }
  0x8c   : > { %2799 = vmatprep.subr.bf16.mxu1 %v4196_v22  ;;  %2414 = vmatpush1.bf16.msra.mxu0 %v4191_v23 }
  0x8d   : > { %2576 = vmatprep.subr.bf16.mxu0 %v4199_v27  ;;  %v4223_v27 = vld [vmem:[%s5750_s3 + $0x284] ss:$16 sps:$4 sm:$0xff]  }
  0x8f   : > { %1000 = vmatmul.mubr.bf16.gmra.mrb[32].mxu0 %v4060_v2  ;;  %2800 = vmatpush1.bf16.msra.mxu1 %v4194_v24  ;;  %v4215_v24 = vld [vmem:[%s5750_s3 + $0x260] ss:$16 sps:$4 sm:$0xff]  }
  0x90   : > { %1009 = vmatprep.mubr.bf16.mxu0 %v4065_v4  ;;  %2962 = vmatprep.subr.bf16.mxu1 %v4202_v28  ;;  %v397_v28 = vsub.s32 2, %v4945_v35 }
  0x92   : > { %1193 = vmatmul.mubr.bf16.gmra.mrb[32].mxu1 %v4060_v2 }
  0x93   : > { %1202 = vmatprep.mubr.bf16.mxu1 %v4065_v4  ;;  %v4206_v4 = vld [vmem:[%s5750_s3 + $0x228] ss:$16 sps:$4 sm:$0xff]  }
  0x97   : > { %1010 = vmatmul.mubr.bf16.gmra.mrb[36].mxu0 %v4069_v8 }
  0x98   : > { %1019 = vmatprep.mubr.bf16.mxu0 %v4074_v10 }
  0x9a   : > { %1203 = vmatmul.mubr.bf16.gmra.mrb[36].mxu1 %v4069_v8  ;;  %v4214_v8 = vld [vmem:[%s5750_s3 + $0x24c] ss:$16 sps:$4 sm:$0xff]  }
  0x9b   : > { %1212 = vmatprep.mubr.bf16.mxu1 %v4074_v10 }
  0x9f   : > { %1020 = vmatmul.mubr.bf16.gmra.mrb[40].mxu0 %v4078_v14 }
  0xa0   : > { %1029 = vmatprep.mubr.bf16.mxu0 %v4083_v16 }
  0xa2   : > { %1213 = vmatmul.mubr.bf16.gmra.mrb[40].mxu1 %v4078_v14  ;;  %v4209_v14 = vld [vmem:[%s5750_s3 + $0x240] ss:$16 sps:$4 sm:$0xff]  }
  0xa3   : > { %1222 = vmatprep.mubr.bf16.mxu1 %v4083_v16 }
  0xa7   : > { %1030 = vmatmul.mubr.bf16.gmra.mrb[44].mxu0 %v4087_v19 }
  0xa8   : > { %1039 = vmatprep.mubr.bf16.mxu0 %v4095_v20 }
  0xaa   : > { %1223 = vmatmul.mubr.bf16.gmra.mrb[44].mxu1 %v4087_v19  ;;  %v4220_v19 = vld [vmem:[%s5750_s3 + $0x26c] ss:$16 sps:$4 sm:$0xff]  }
  0xab   : > { %1232 = vmatprep.mubr.bf16.mxu1 %v4095_v20 }
  0xaf   : > { %1040 = vmatmul.mubr.bf16.gmra.mrb[48].mxu0 %v4097_v25 }
  0xb0   : > { %1049 = vmatprep.mubr.bf16.mxu0 %v4104_v26 }
  0xb2   : > { %1233 = vmatmul.mubr.bf16.gmra.mrb[48].mxu1 %v4097_v25 }
  0xb3   : > { %1242 = vmatprep.mubr.bf16.mxu1 %v4104_v26  ;;  %v4218_v26 = vld [vmem:[%s5750_s3 + $0x268] ss:$16 sps:$4 sm:$0xff]  }
  0xb7   : > { %1050 = vmatmul.mubr.bf16.gmra.mrb[52].mxu0 %v4106_v29 }
  0xb8   : > { %1059 = vmatprep.mubr.bf16.mxu0 %v4113_v30 }
  0xba   : > { %1243 = vmatmul.mubr.bf16.gmra.mrb[52].mxu1 %v4106_v29 }
  0xbb   : > { %1252 = vmatprep.mubr.bf16.mxu1 %v4113_v30 }
  0xbf   : > { %1060 = vmatmul.mubr.bf16.gmra.mrb[56].mxu0 %v4115_v31 }
  0xc0   : > { %1069 = vmatprep.mubr.bf16.mxu0 %v4122_v32 }
  0xc2   : > { %1253 = vmatmul.mubr.bf16.gmra.mrb[56].mxu1 %v4115_v31  ;;  %v4226_v31 = vld [vmem:[%s5750_s3 + $0x28c] ss:$16 sps:$4 sm:$0xff]  }
  0xc3   : > { %1262 = vmatprep.mubr.bf16.mxu1 %v4122_v32  ;;  %v401_v32 = vsub.s32 3, %v4945_v35 }
  0xc7   : > { %1070 = vmatmul.mubr.bf16.gmra.mrb[60].mxu0 %v4124_v33 }
  0xca   : > { %1263 = vmatmul.mubr.bf16.gmra.mrb[60].mxu1 %v4124_v33 }
 0x122   : > { %v921_v41 = vpop.f32.mrb[0].mxu0 }
 0x123   : > { %v922_v42 = vadd.f32 %v921_v41, %v4957_v39  ;;  %v923_v43 = vpop.f32.mrb[1].mxu0 }
 0x124   : > { %v924_v44 = vadd.f32 %v923_v43, %v4962_v40  ;;  %v925_v45 = vpop.f32.mrb[2].mxu0 }
 0x125   : > { %v926_v46 = vadd.f32 %v925_v45, %v4957_v39  ;;  %v927_v47 = vpop.f32.mrb[3].mxu0  ;;  %v1273_v49 = vmax.f32 %v922_v42, 0.0  ;;  %v4224_v45 = vld [vmem:[%s5750_s3 + $0x288] ss:$16 sps:$4 sm:$0xff]  }
 0x126   : > { %v928_v48 = vadd.f32 %v927_v47, %v4962_v40  ;;  %v1274_v51 = vmax.f32 %v924_v44, 0.0  ;;  %v4221_v44 = vld [vmem:[%s5750_s3 + $0x280] ss:$16 sps:$4 sm:$0xff]  }
 0x127   : > { %v1277_v50 = vmax.f32 %v926_v46, 0.0  ;;  %v5035_v46 = vrot.slane %v4951_v37, %v397_v28 }
 0x128   : > { %v1278_v52 = vmax.f32 %v928_v48, 0.0 }
 0x129   : > { %v1401_v53 = vpack.c.bf16 %v1277_v50, %v1273_v49  ;;  %v4229_v49 = vld [vmem:[%s5750_s3 + $0x2a4] ss:$16 sps:$4 sm:$0xff]   ;;  %v4232_v50 = vld [vmem:[%s5750_s3 + $0x2ac] ss:$16 sps:$4 sm:$0xff]  }
 0x12a   : > { %v1402_v54 = vpack.c.bf16 %v1278_v52, %v1274_v51  ;;  %v931_v55 = vpop.f32.mrb[4].mxu0  ;;  %v5047_v51 = vrot.slane %v4951_v37, %v401_v32  ;;  %v4230_v37 = vld [vmem:[%s5750_s3 + $0x2a8] ss:$16 sps:$4 sm:$0xff]  }
 0x12b   : > { %v932_v58 = vadd.f32 %v931_v55, %v4957_v39  ;;  %v933_v59 = vpop.f32.mrb[5].mxu0 }
 0x12c   : > { %v934_v62 = vadd.f32 %v933_v59, %v4962_v40  ;;  %v935_v63 = vpop.f32.mrb[6].mxu0  ;;  %2415 = vmatprep.mubr.bf16.mxu0 %v1402_v54  ;;  %2801 = vmatprep.mubr.bf16.mxu1 %v1402_v54  ;;  %v4235_v59 = vld [vmem:[%s5750_s3 + $0x2c4] ss:$16 sps:$4 sm:$0xff]  }
 0x12d   : > { %v936_v0 = vadd.f32 %v935_v63, %v4957_v39  ;;  %v937_v1 = vpop.f32.mrb[7].mxu0  ;;  %2416 = vmatmul.mubr.bf16.vlgmr.msra.gmra.mrb[64].mxu0 %v1401_v53  ;;  %2802 = vmatmul.mubr.bf16.vlgmr.msra.gmra.mrb[64].mxu1 %v1401_v53  ;;  %v1281_v5 = vmax.f32 %v932_v58, 0.0 }
 0x12e   : > { %v938_v2 = vadd.f32 %v937_v1, %v4962_v40  ;;  %2577 = vmatpush1.bf16.msra.mxu0 %v4197_v56  ;;  %2963 = vmatpush1.bf16.msra.mxu1 %v4200_v57  ;;  %v1282_v9 = vmax.f32 %v934_v62, 0.0  ;;  %v4227_v56 = vld [vmem:[%s5750_s3 + $0x2a0] ss:$16 sps:$4 sm:$0xff]   ;;  %v1114_v57 = vpop.f32.mrb[0].mxu1 }
 0x12f   : > { %v1285_v6 = vmax.f32 %v936_v0, 0.0  ;;  %2578 = vmatprep.subr.bf16.mxu0 %v4205_v60  ;;  %2964 = vmatprep.subr.bf16.mxu1 %v4208_v61  ;;  %v1115_v60 = vadd.f32 %v1114_v57, %v5035_v46  ;;  %v1116_v61 = vpop.f32.mrb[1].mxu1  ;;  %v4238_v0 = vld [vmem:[%s5750_s3 + $0x2cc] ss:$16 sps:$4 sm:$0xff]  }
 0x130   : > { %v1286_v10 = vmax.f32 %v938_v2, 0.0  ;;  %v1117_v1 = vadd.f32 %v1116_v61, %v5047_v51  ;;  %v1118_v2 = vpop.f32.mrb[2].mxu1 }
 0x131   : > { %v1405_v11 = vpack.c.bf16 %v1285_v6, %v1281_v5  ;;  %v1275_v5 = vmax.f32 %v1115_v60, 0.0  ;;  %v1119_v6 = vadd.f32 %v1118_v2, %v5035_v46 }
 0x132   : > { %v1406_v12 = vpack.c.bf16 %v1286_v10, %v1282_v9  ;;  %v941_v13 = vpop.f32.mrb[8].mxu0  ;;  %2579 = vmatpush1.bf16.msra.mxu0 %v4203_v3  ;;  %2965 = vmatpush1.bf16.msra.mxu1 %v4206_v4  ;;  %v1276_v9 = vmax.f32 %v1117_v1, 0.0 }
 0x133   : > { %v942_v16 = vadd.f32 %v941_v13, %v4957_v39  ;;  %v943_v17 = vpop.f32.mrb[9].mxu0  ;;  %2580 = vmatprep.subr.bf16.mxu0 %v4211_v7  ;;  %2966 = vmatprep.subr.bf16.mxu1 %v4214_v8  ;;  %v1120_v7 = vpop.f32.mrb[3].mxu1  ;;  %v4233_v13 = vld [vmem:[%s5750_s3 + $0x2c0] ss:$16 sps:$4 sm:$0xff]  }
 0x134   : > { %v944_v20 = vadd.f32 %v943_v17, %v4962_v40  ;;  %v945_v21 = vpop.f32.mrb[10].mxu0  ;;  %2425 = vmatprep.mubr.bf16.mxu0 %v1406_v12  ;;  %2811 = vmatprep.mubr.bf16.mxu1 %v1406_v12  ;;  %v1121_v10 = vadd.f32 %v1120_v7, %v5047_v51  ;;  %v4251_v7 = vld [vmem:[%s5750_s3 + $0x320] ss:$16 sps:$4 sm:$0xff]  }
 0x135   : > { %v946_v22 = vadd.f32 %v945_v21, %v4957_v39  ;;  %v947_v23 = vpop.f32.mrb[11].mxu0  ;;  %2426 = vmatmul.mubr.bf16.gmra.mrb[68].mxu0 %v1405_v11  ;;  %2812 = vmatmul.mubr.bf16.gmra.mrb[68].mxu1 %v1405_v11  ;;  %v1289_v29 = vmax.f32 %v942_v16, 0.0 }
 0x136   : > { %v948_v25 = vadd.f32 %v947_v23, %v4962_v40  ;;  %2581 = vmatpush1.bf16.msra.mxu0 %v4209_v14  ;;  %2967 = vmatpush1.bf16.msra.mxu1 %v4212_v15  ;;  %v1290_v33 = vmax.f32 %v944_v20, 0.0  ;;  %v4236_v14 = vld [vmem:[%s5750_s3 + $0x2c8] ss:$16 sps:$4 sm:$0xff]   ;;  %v1279_v15 = vmax.f32 %v1119_v6, 0.0  ;;  %v1280_v20 = vmax.f32 %v1121_v10, 0.0 }
 0x137   : > { %v1293_v30 = vmax.f32 %v946_v22, 0.0  ;;  %2582 = vmatprep.subr.bf16.mxu0 %v4217_v18  ;;  %2968 = vmatprep.subr.bf16.mxu1 %v4220_v19  ;;  %v4241_v18 = vld [vmem:[%s5750_s3 + $0x2e4] ss:$16 sps:$4 sm:$0xff]   ;;  %v4244_v19 = vld [vmem:[%s5750_s3 + $0x2ec] ss:$16 sps:$4 sm:$0xff]  }
 0x138   : > { %v1294_v34 = vmax.f32 %v948_v25, 0.0  ;;  %v5082_v23 = vpack.c.bf16 %v1279_v15, %v1275_v5 }
 0x139   : > { %v1409_v41 = vpack.c.bf16 %v1293_v30, %v1289_v29  ;;  %v1124_v29 = vpop.f32.mrb[4].mxu1 }
 0x13a   : > { %v1410_v42 = vpack.c.bf16 %v1294_v34, %v1290_v33  ;;  %v951_v43 = vpop.f32.mrb[12].mxu0  ;;  %2583 = vmatpush1.bf16.msra.mxu0 %v4215_v24  ;;  %2969 = vmatpush1.bf16.msra.mxu1 %v4218_v26  ;;  %v4239_v26 = vld [vmem:[%s5750_s3 + $0x2e0] ss:$16 sps:$4 sm:$0xff]   ;;  %v4247_v33 = vld [vmem:[%s5750_s3 + $0x304] ss:$16 sps:$4 sm:$0xff]   ;;  %v1125_v34 = vadd.f32 %v1124_v29, %v5035_v46 }
 0x13b   : > { %v952_v47 = vadd.f32 %v951_v43, %v4957_v39  ;;  %v953_v48 = vpop.f32.mrb[13].mxu0  ;;  %2584 = vmatprep.subr.bf16.mxu0 %v4223_v27  ;;  %2970 = vmatprep.subr.bf16.mxu1 %v4226_v31  ;;  %v5088_v27 = vpack.c.bf16 %v1280_v20, %v1276_v9  ;;  %v4242_v31 = vld [vmem:[%s5750_s3 + $0x2e8] ss:$16 sps:$4 sm:$0xff]  }
 0x13c   : > { %v954_v52 = vadd.f32 %v953_v48, %v4962_v40  ;;  %v955_v53 = vpop.f32.mrb[14].mxu0  ;;  %2435 = vmatprep.mubr.bf16.mxu0 %v1410_v42  ;;  %2821 = vmatprep.mubr.bf16.mxu1 %v1410_v42 }
 0x13d   : > { %v956_v54 = vadd.f32 %v955_v53, %v4957_v39  ;;  %v957_v55 = vpop.f32.mrb[15].mxu0  ;;  %2436 = vmatmul.mubr.bf16.gmra.mrb[72].mxu0 %v1409_v41  ;;  %2822 = vmatmul.mubr.bf16.gmra.mrb[72].mxu1 %v1409_v41  ;;  %v1297_v62 = vmax.f32 %v952_v47, 0.0  ;;  %v1126_v41 = vpop.f32.mrb[5].mxu1 }
 0x13e   : > { %v958_v58 = vadd.f32 %v957_v55, %v4962_v40  ;;  %2585 = vmatpush1.bf16.msra.mxu0 %v4221_v44  ;;  %2971 = vmatpush1.bf16.msra.mxu1 %v4224_v45  ;;  %v1298_v3 = vmax.f32 %v954_v52, 0.0  ;;  %v4250_v44 = vld [vmem:[%s5750_s3 + $0x30c] ss:$16 sps:$4 sm:$0xff]   ;;  %v1127_v45 = vadd.f32 %v1126_v41, %v5047_v51  ;;  %v1128_v47 = vpop.f32.mrb[6].mxu1  ;;  %v4260_v41 = vld [vmem:[%s5750_s3 + $0x348] ss:$16 sps:$4 sm:$0xff]  }
 0x13f   : > { %v1301_v63 = vmax.f32 %v956_v54, 0.0  ;;  %2586 = vmatprep.subr.bf16.mxu0 %v4229_v49  ;;  %2972 = vmatprep.subr.bf16.mxu1 %v4232_v50  ;;  %v1283_v50 = vmax.f32 %v1125_v34, 0.0  ;;  %v1129_v52 = vadd.f32 %v1128_v47, %v5035_v46  ;;  %v1130_v53 = vpop.f32.mrb[7].mxu1  ;;  %v4257_v34 = vld [vmem:[%s5750_s3 + $0x340] ss:$16 sps:$4 sm:$0xff]  }
 0x140   : > { %v1302_v4 = vmax.f32 %v958_v58, 0.0  ;;  %v1284_v55 = vmax.f32 %v1127_v45, 0.0  ;;  %v1134_v9 = vpop.f32.mrb[8].mxu1  ;;  %v4265_v45 = vld [vmem:[%s5750_s3 + $0x364] ss:$16 sps:$4 sm:$0xff]  }
 0x141   : > { %v1413_v8 = vpack.c.bf16 %v1301_v63, %v1297_v62  ;;  %v1287_v60 = vmax.f32 %v1129_v52, 0.0  ;;  %v4253_v63 = vld [vmem:[%s5750_s3 + $0x324] ss:$16 sps:$4 sm:$0xff]   ;;  %v4268_v47 = vld [vmem:[%s5750_s3 + $0x36c] ss:$16 sps:$4 sm:$0xff]  }
 0x142   : > { %v1414_v11 = vpack.c.bf16 %v1302_v4, %v1298_v3  ;;  %v961_v12 = vpop.f32.mrb[16].mxu0  ;;  %2587 = vmatpush1.bf16.msra.mxu0 %v4227_v56  ;;  %2973 = vmatpush1.bf16.msra.mxu1 %v4230_v37  ;;  %v1131_v56 = vadd.f32 %v1130_v53, %v5047_v51  ;;  %v4245_v37 = vld [vmem:[%s5750_s3 + $0x300] ss:$16 sps:$4 sm:$0xff]  }
 0x143   : > { %v962_v16 = vadd.f32 %v961_v12, %v4957_v39  ;;  %v963_v17 = vpop.f32.mrb[17].mxu0  ;;  %2588 = vmatprep.subr.bf16.mxu0 %v4235_v59  ;;  %2974 = vmatprep.subr.bf16.mxu1 %v4238_v0  ;;  %v4248_v59 = vld [vmem:[%s5750_s3 + $0x308] ss:$16 sps:$4 sm:$0xff]   ;;  %v4256_v0 = vld [vmem:[%s5750_s3 + $0x32c] ss:$16 sps:$4 sm:$0xff]   ;;  %v5118_v4 = vpack.c.bf16 %v1287_v60, %v1283_v50 }
 0x144   : > { %v964_v21 = vadd.f32 %v963_v17, %v4962_v40  ;;  %v965_v22 = vpop.f32.mrb[18].mxu0  ;;  %2445 = vmatprep.mubr.bf16.mxu0 %v1414_v11  ;;  %2831 = vmatprep.mubr.bf16.mxu1 %v1414_v11  ;;  %v1288_v1 = vmax.f32 %v1131_v56, 0.0  ;;  %v4254_v11 = vld [vmem:[%s5750_s3 + $0x328] ss:$16 sps:$4 sm:$0xff]   ;;  %v4259_v12 = vld [vmem:[%s5750_s3 + $0x344] ss:$16 sps:$4 sm:$0xff]  }
 0x145   : > { %v966_v24 = vadd.f32 %v965_v22, %v4957_v39  ;;  %v967_v25 = vpop.f32.mrb[19].mxu0  ;;  %2446 = vmatmul.mubr.bf16.gmra.mrb[76].mxu0 %v1413_v8  ;;  %2832 = vmatmul.mubr.bf16.gmra.mrb[76].mxu1 %v1413_v8  ;;  %v1305_v42 = vmax.f32 %v962_v16, 0.0  ;;  %v4262_v17 = vld [vmem:[%s5750_s3 + $0x34c] ss:$16 sps:$4 sm:$0xff]  }
 0x146   : > { %v968_v30 = vadd.f32 %v967_v25, %v4962_v40  ;;  %2589 = vmatpush1.bf16.msra.mxu0 %v4233_v13  ;;  %2975 = vmatpush1.bf16.msra.mxu1 %v4236_v14  ;;  %v1306_v48 = vmax.f32 %v964_v21, 0.0  ;;  %v5124_v8 = vpack.c.bf16 %v1288_v1, %v1284_v55  ;;  %v1135_v13 = vadd.f32 %v1134_v9, %v5035_v46  ;;  %v1136_v14 = vpop.f32.mrb[9].mxu1  ;;  %v4263_v55 = vld [vmem:[%s5750_s3 + $0x360] ss:$16 sps:$4 sm:$0xff]  }
 0x147   : > { %v1309_v43 = vmax.f32 %v966_v24, 0.0  ;;  %2590 = vmatprep.subr.bf16.mxu0 %v4241_v18  ;;  %2976 = vmatprep.subr.bf16.mxu1 %v4244_v19  ;;  %v1137_v18 = vadd.f32 %v1136_v14, %v5047_v51  ;;  %v1138_v19 = vpop.f32.mrb[10].mxu1 }
 0x148   : > { %v1310_v49 = vmax.f32 %v968_v30, 0.0  ;;  %v1291_v22 = vmax.f32 %v1135_v13, 0.0  ;;  %v1139_v24 = vadd.f32 %v1138_v19, %v5035_v46  ;;  %v1140_v25 = vpop.f32.mrb[11].mxu1 }
 0x149   : > { %v1417_v54 = vpack.c.bf16 %v1309_v43, %v1305_v42  ;;  %v1292_v29 = vmax.f32 %v1137_v18, 0.0  ;;  %v1141_v30 = vadd.f32 %v1140_v25, %v5047_v51 }
 0x14a   : > { %v1418_v57 = vpack.c.bf16 %v1310_v49, %v1306_v48  ;;  %v971_v58 = vpop.f32.mrb[20].mxu0  ;;  %2591 = vmatpush1.bf16.msra.mxu0 %v4239_v26  ;;  %2977 = vmatpush1.bf16.msra.mxu1 %v4242_v31  ;;  %v1295_v42 = vmax.f32 %v1139_v24, 0.0 }
 0x14b   : > { %v972_v61 = vadd.f32 %v971_v58, %v4957_v39  ;;  %v973_v62 = vpop.f32.mrb[21].mxu0  ;;  %2592 = vmatprep.subr.bf16.mxu0 %v4247_v33  ;;  %2978 = vmatprep.subr.bf16.mxu1 %v4250_v44  ;;  %v1296_v48 = vmax.f32 %v1141_v30, 0.0 }
 0x14c   : > { %v974_v2 = vadd.f32 %v973_v62, %v4962_v40  ;;  %v975_v3 = vpop.f32.mrb[22].mxu0  ;;  %2455 = vmatprep.mubr.bf16.mxu0 %v1418_v57  ;;  %2841 = vmatprep.mubr.bf16.mxu1 %v1418_v57  ;;  %v5154_v52 = vpack.c.bf16 %v1295_v42, %v1291_v22  ;;  %v1144_v57 = vpop.f32.mrb[12].mxu1  ;;  %v4278_v42 = vld [vmem:[%s5750_s3 + $0x3a8] ss:$16 sps:$4 sm:$0xff]  }
 0x14d   : > { %v976_v5 = vadd.f32 %v975_v3, %v4957_v39  ;;  %v977_v6 = vpop.f32.mrb[23].mxu0  ;;  %2456 = vmatmul.mubr.bf16.gmra.mrb[80].mxu0 %v1417_v54  ;;  %2842 = vmatmul.mubr.bf16.gmra.mrb[80].mxu1 %v1417_v54  ;;  %v1313_v15 = vmax.f32 %v972_v61, 0.0  ;;  %v5160_v56 = vpack.c.bf16 %v1296_v48, %v1292_v29  ;;  %v1145_v60 = vadd.f32 %v1144_v57, %v5035_v46  ;;  %v1146_v61 = vpop.f32.mrb[13].mxu1 }
 0x14e   : > { %v978_v10 = vadd.f32 %v977_v6, %v4962_v40  ;;  %2593 = vmatpush1.bf16.msra.mxu0 %v4245_v37  ;;  %2979 = vmatpush1.bf16.msra.mxu1 %v4248_v59  ;;  %v1314_v20 = vmax.f32 %v974_v2, 0.0  ;;  %v4266_v37 = vld [vmem:[%s5750_s3 + $0x368] ss:$16 sps:$4 sm:$0xff]   ;;  %v4271_v59 = vld [vmem:[%s5750_s3 + $0x384] ss:$16 sps:$4 sm:$0xff]   ;;  %v1147_v1 = vadd.f32 %v1146_v61, %v5047_v51  ;;  %v1148_v2 = vpop.f32.mrb[14].mxu1 }
 0x14f   : > { %v1317_v16 = vmax.f32 %v976_v5, 0.0  ;;  %2594 = vmatprep.subr.bf16.mxu0 %v4253_v63  ;;  %2980 = vmatprep.subr.bf16.mxu1 %v4256_v0  ;;  %v4274_v0 = vld [vmem:[%s5750_s3 + $0x38c] ss:$16 sps:$4 sm:$0xff]   ;;  %v1299_v6 = vmax.f32 %v1145_v60, 0.0  ;;  %v1150_v9 = vpop.f32.mrb[15].mxu1 }
 0x150   : > { %v1318_v21 = vmax.f32 %v978_v10, 0.0 }
 0x151   : > { %v1421_v26 = vpack.c.bf16 %v1317_v16, %v1313_v15  ;;  %v4269_v15 = vld [vmem:[%s5750_s3 + $0x380] ss:$16 sps:$4 sm:$0xff]   ;;  %v4272_v16 = vld [vmem:[%s5750_s3 + $0x388] ss:$16 sps:$4 sm:$0xff]  }
 0x152   : > { %v1422_v31 = vpack.c.bf16 %v1318_v21, %v1314_v20  ;;  %v981_v33 = vpop.f32.mrb[24].mxu0  ;;  %2595 = vmatpush1.bf16.msra.mxu0 %v4251_v7  ;;  %2981 = vmatpush1.bf16.msra.mxu1 %v4254_v11  ;;  %v1149_v7 = vadd.f32 %v1148_v2, %v5035_v46  ;;  %v1300_v11 = vmax.f32 %v1147_v1, 0.0  ;;  %v4277_v20 = vld [vmem:[%s5750_s3 + $0x3a4] ss:$16 sps:$4 sm:$0xff]   ;;  %v4280_v21 = vld [vmem:[%s5750_s3 + $0x3ac] ss:$16 sps:$4 sm:$0xff]  }
 0x153   : > { %v982_v43 = vadd.f32 %v981_v33, %v4957_v39  ;;  %v983_v44 = vpop.f32.mrb[25].mxu0  ;;  %2596 = vmatprep.subr.bf16.mxu0 %v4259_v12  ;;  %2982 = vmatprep.subr.bf16.mxu1 %v4262_v17  ;;  %v1151_v12 = vadd.f32 %v1150_v9, %v5047_v51  ;;  %v4284_v1 = vld [vmem:[%s5750_s3 + $0x3c8] ss:$16 sps:$4 sm:$0xff]   ;;  %v4292_v9 = vld [vmem:[%s5750_s3 + $0x3ec] ss:$16 sps:$4 sm:$0xff]  }
 0x154   : > { %v984_v49 = vadd.f32 %v983_v44, %v4962_v40  ;;  %v985_v50 = vpop.f32.mrb[26].mxu0  ;;  %2465 = vmatprep.mubr.bf16.mxu0 %v1422_v31  ;;  %2851 = vmatprep.mubr.bf16.mxu1 %v1422_v31  ;;  %v1303_v17 = vmax.f32 %v1149_v7, 0.0  ;;  %v4275_v31 = vld [vmem:[%s5750_s3 + $0x3a0] ss:$16 sps:$4 sm:$0xff]   ;;  %v4289_v7 = vld [vmem:[%s5750_s3 + $0x3e4] ss:$16 sps:$4 sm:$0xff]  }
 0x155   : > { %v986_v53 = vadd.f32 %v985_v50, %v4957_v39  ;;  %v987_v54 = vpop.f32.mrb[27].mxu0  ;;  %2466 = vmatmul.mubr.bf16.gmra.mrb[84].mxu0 %v1421_v26  ;;  %2852 = vmatmul.mubr.bf16.gmra.mrb[84].mxu1 %v1421_v26  ;;  %v1321_v62 = vmax.f32 %v982_v43, 0.0  ;;  %v1304_v22 = vmax.f32 %v1151_v12, 0.0  ;;  %v4283_v43 = vld [vmem:[%s5750_s3 + $0x3c4] ss:$16 sps:$4 sm:$0xff]  }
 0x156   : > { %v988_v58 = vadd.f32 %v987_v54, %v4962_v40  ;;  %2597 = vmatpush1.bf16.msra.mxu0 %v4257_v34  ;;  %2983 = vmatpush1.bf16.msra.mxu1 %v4260_v41  ;;  %v1322_v3 = vmax.f32 %v984_v49, 0.0  ;;  %v5190_v26 = vpack.c.bf16 %v1303_v17, %v1299_v6  ;;  %v1154_v34 = vpop.f32.mrb[16].mxu1  ;;  %v4286_v49 = vld [vmem:[%s5750_s3 + $0x3cc] ss:$16 sps:$4 sm:$0xff]  }
 0x157   : > { %v1325_v63 = vmax.f32 %v986_v53, 0.0  ;;  %2598 = vmatprep.subr.bf16.mxu0 %v4265_v45  ;;  %2984 = vmatprep.subr.bf16.mxu1 %v4268_v47  ;;  %v5196_v33 = vpack.c.bf16 %v1304_v22, %v1300_v11  ;;  %v1155_v44 = vadd.f32 %v1154_v34, %v5035_v46  ;;  %v1156_v45 = vpop.f32.mrb[17].mxu1 }
 0x158   : > { %v1326_v5 = vmax.f32 %v988_v58, 0.0  ;;  %v1157_v50 = vadd.f32 %v1156_v45, %v5047_v51  ;;  %v1158_v53 = vpop.f32.mrb[18].mxu1 }
 0x159   : > { %v1425_v10 = vpack.c.bf16 %v1325_v63, %v1321_v62  ;;  %v1307_v57 = vmax.f32 %v1155_v44, 0.0  ;;  %v1159_v58 = vadd.f32 %v1158_v53, %v5035_v46 }
 0x15a   : > { %v1426_v13 = vpack.c.bf16 %v1326_v5, %v1322_v3  ;;  %v991_v14 = vpop.f32.mrb[28].mxu0  ;;  %2599 = vmatpush1.bf16.msra.mxu0 %v4263_v55  ;;  %2985 = vmatpush1.bf16.msra.mxu1 %v4266_v37  ;;  %v1160_v37 = vpop.f32.mrb[19].mxu1  ;;  %v1308_v60 = vmax.f32 %v1157_v50, 0.0 }
 0x15b   : > { %v992_v18 = vadd.f32 %v991_v14, %v4957_v39  ;;  %v993_v19 = vpop.f32.mrb[29].mxu0  ;;  %2600 = vmatprep.subr.bf16.mxu0 %v4271_v59  ;;  %2986 = vmatprep.subr.bf16.mxu1 %v4274_v0  ;;  %v1161_v61 = vadd.f32 %v1160_v37, %v5047_v51  ;;  %v4281_v0 = vld [vmem:[%s5750_s3 + $0x3c0] ss:$16 sps:$4 sm:$0xff]   ;;  %v1311_v2 = vmax.f32 %v1159_v58, 0.0 }
 0x15c   : > { %v994_v24 = vadd.f32 %v993_v19, %v4962_v40  ;;  %v995_v25 = vpop.f32.mrb[30].mxu0  ;;  %2475 = vmatprep.mubr.bf16.mxu0 %v1426_v13  ;;  %2861 = vmatprep.mubr.bf16.mxu1 %v1426_v13  ;;  %v4290_v19 = vld [vmem:[%s5750_s3 + $0x3e8] ss:$16 sps:$4 sm:$0xff]  }
 0x15d   : > { %v996_v29 = vadd.f32 %v995_v25, %v4957_v39  ;;  %v997_v30 = vpop.f32.mrb[31].mxu0  ;;  %2476 = vmatmul.mubr.bf16.gmra.mrb[88].mxu0 %v1425_v10  ;;  %2862 = vmatmul.mubr.bf16.gmra.mrb[88].mxu1 %v1425_v10  ;;  %v1329_v47 = vmax.f32 %v992_v18, 0.0  ;;  %v1312_v6 = vmax.f32 %v1161_v61, 0.0  ;;  %v5226_v12 = vpack.c.bf16 %v1311_v2, %v1307_v57  ;;  %v4287_v18 = vld [vmem:[%s5750_s3 + $0x3e0] ss:$16 sps:$4 sm:$0xff]  }
 0x15e   : > { %v998_v41 = vadd.f32 %v997_v30, %v4962_v40  ;;  %2601 = vmatpush1.bf16.msra.mxu0 %v4269_v15  ;;  %2987 = vmatpush1.bf16.msra.mxu1 %v4272_v16  ;;  %v1330_v54 = vmax.f32 %v994_v24, 0.0  ;;  %v1164_v16 = vpop.f32.mrb[20].mxu1 }
 0x15f   : > { %v1333_v48 = vmax.f32 %v996_v29, 0.0  ;;  %2602 = vmatprep.subr.bf16.mxu0 %v4277_v20  ;;  %2988 = vmatprep.subr.bf16.mxu1 %v4280_v21  ;;  %v5229_v15 = vpack.c.bf16 %v1312_v6, %v1308_v60  ;;  %v1165_v20 = vadd.f32 %v1164_v16, %v5035_v46  ;;  %v1166_v21 = vpop.f32.mrb[21].mxu1 }
 0x160   : > { %v1334_v55 = vmax.f32 %v998_v41, 0.0  ;;  %v1167_v25 = vadd.f32 %v1166_v21, %v5047_v51  ;;  %v1168_v29 = vpop.f32.mrb[22].mxu1 }
 0x161   : > { %v1429_v59 = vpack.c.bf16 %v1333_v48, %v1329_v47  ;;  %v1315_v34 = vmax.f32 %v1165_v20, 0.0  ;;  %v1169_v41 = vadd.f32 %v1168_v29, %v5035_v46 }
 0x162   : > { %v1430_v62 = vpack.c.bf16 %v1334_v55, %v1330_v54  ;;  %v1001_v63 = vpop.f32.mrb[32].mxu0  ;;  %2603 = vmatpush1.bf16.msra.mxu0 %v4275_v31  ;;  %2989 = vmatpush1.bf16.msra.mxu1 %v4278_v42  ;;  %v1170_v42 = vpop.f32.mrb[23].mxu1  ;;  %v1316_v44 = vmax.f32 %v1167_v25, 0.0 }
 0x163   : > { %v1002_v3 = vadd.f32 %v1001_v63, %v4957_v39  ;;  %v1003_v5 = vpop.f32.mrb[33].mxu0  ;;  %2604 = vmatprep.subr.bf16.mxu0 %v4283_v43  ;;  %2990 = vmatprep.subr.bf16.mxu1 %v4286_v49  ;;  %v1171_v45 = vadd.f32 %v1170_v42, %v5047_v51  ;;  %v1319_v49 = vmax.f32 %v1169_v41, 0.0  ;;  %v1174_v61 = vpop.f32.mrb[24].mxu1 }
 0x164   : > { %v1004_v10 = vadd.f32 %v1003_v5, %v4962_v40  ;;  %v1005_v11 = vpop.f32.mrb[34].mxu0  ;;  %2485 = vmatprep.mubr.bf16.mxu0 %v1430_v62  ;;  %2871 = vmatprep.mubr.bf16.mxu1 %v1430_v62  ;;  %v1175_v63 = vadd.f32 %v1174_v61, %v5035_v46 }
 0x165   : > { %v1006_v13 = vadd.f32 %v1005_v11, %v4957_v39  ;;  %v1007_v14 = vpop.f32.mrb[35].mxu0  ;;  %2486 = vmatmul.mubr.bf16.gmra.mrb[92].mxu0 %v1429_v59  ;;  %2872 = vmatmul.mubr.bf16.gmra.mrb[92].mxu1 %v1429_v59  ;;  %v1337_v22 = vmax.f32 %v1002_v3, 0.0  ;;  %v1320_v54 = vmax.f32 %v1171_v45, 0.0  ;;  %v5244_v58 = vpack.c.bf16 %v1319_v49, %v1315_v34 }
 0x166   : > { %v1008_v17 = vadd.f32 %v1007_v14, %v4962_v40  ;;  %2605 = vmatpush1.bf16.msra.mxu0 %v4281_v0  ;;  %2991 = vmatpush1.bf16.msra.mxu1 %v4284_v1  ;;  %v1338_v30 = vmax.f32 %v1004_v10, 0.0  ;;  %v1176_v0 = vpop.f32.mrb[25].mxu1 }
 0x167   : > { %v1341_v24 = vmax.f32 %v1006_v13, 0.0  ;;  %2606 = vmatprep.subr.bf16.mxu0 %v4289_v7  ;;  %2992 = vmatprep.subr.bf16.mxu1 %v4292_v9  ;;  %v5247_v60 = vpack.c.bf16 %v1320_v54, %v1316_v44  ;;  %v1177_v3 = vadd.f32 %v1176_v0, %v5047_v51  ;;  %v1178_v5 = vpop.f32.mrb[26].mxu1  ;;  %v1323_v9 = vmax.f32 %v1175_v63, 0.0 }
 0x168   : > { %v1342_v31 = vmax.f32 %v1008_v17, 0.0  ;;  %v1179_v10 = vadd.f32 %v1178_v5, %v5035_v46  ;;  %v1180_v11 = vpop.f32.mrb[27].mxu1 }
 0x169   : > { %v1433_v43 = vpack.c.bf16 %v1341_v24, %v1337_v22  ;;  %v1324_v14 = vmax.f32 %v1177_v3, 0.0  ;;  %v1181_v16 = vadd.f32 %v1180_v11, %v5047_v51  ;;  %v1184_v41 = vpop.f32.mrb[28].mxu1 }
 0x16a   : > { %v1434_v47 = vpack.c.bf16 %v1342_v31, %v1338_v30  ;;  %v1011_v48 = vpop.f32.mrb[36].mxu0  ;;  %2607 = vmatpush1.bf16.msra.mxu0 %v4287_v18  ;;  %2993 = vmatpush1.bf16.msra.mxu1 %v4290_v19  ;;  %v1327_v19 = vmax.f32 %v1179_v10, 0.0  ;;  %v1186_v44 = vpop.f32.mrb[29].mxu1 }
 0x16b   : > { %v1012_v50 = vadd.f32 %v1011_v48, %v4957_v39  ;;  %v1013_v53 = vpop.f32.mrb[37].mxu0  ;;  %v1328_v22 = vmax.f32 %v1181_v16, 0.0  ;;  %v1187_v48 = vadd.f32 %v1186_v44, %v5047_v51  ;;  %v1188_v49 = vpop.f32.mrb[30].mxu1 }
 0x16c   : > { %v1014_v55 = vadd.f32 %v1013_v53, %v4962_v40  ;;  %v1015_v57 = vpop.f32.mrb[38].mxu0  ;;  %2495 = vmatprep.mubr.bf16.mxu0 %v1434_v47  ;;  %2881 = vmatprep.mubr.bf16.mxu1 %v1434_v47  ;;  %v5256_v29 = vpack.c.bf16 %v1327_v19, %v1323_v9 }
 0x16d   : > { %v1016_v37 = vadd.f32 %v1015_v57, %v4957_v39  ;;  %v1017_v59 = vpop.f32.mrb[39].mxu0  ;;  %2496 = vmatmul.mubr.bf16.gmra.mrb[96].mxu0 %v1433_v43  ;;  %2882 = vmatmul.mubr.bf16.gmra.mrb[96].mxu1 %v1433_v43  ;;  %v1345_v1 = vmax.f32 %v1012_v50, 0.0  ;;  %v5259_v34 = vpack.c.bf16 %v1328_v22, %v1324_v14  ;;  %v1185_v43 = vadd.f32 %v1184_v41, %v5035_v46  ;;  %v1190_v57 = vpop.f32.mrb[31].mxu1 }
 0x16e   : > { %v1018_v62 = vadd.f32 %v1017_v59, %v4962_v40  ;;  %v1346_v6 = vmax.f32 %v1014_v55, 0.0  ;;  %v1189_v55 = vadd.f32 %v1188_v49, %v5035_v46  ;;  %v1332_v59 = vmax.f32 %v1187_v48, 0.0 }
 0x16f   : > { %v1349_v2 = vmax.f32 %v1016_v37, 0.0  ;;  %v1331_v54 = vmax.f32 %v1185_v43, 0.0  ;;  %v1191_v61 = vadd.f32 %v1190_v57, %v5047_v51 }
 0x170   : > { %v1350_v7 = vmax.f32 %v1018_v62, 0.0  ;;  %v1335_v0 = vmax.f32 %v1189_v55, 0.0 }
 0x171   : > { %v1437_v13 = vpack.c.bf16 %v1349_v2, %v1345_v1  ;;  %v1336_v3 = vmax.f32 %v1191_v61, 0.0 }
 0x172   : > { %v1438_v17 = vpack.c.bf16 %v1350_v7, %v1346_v6  ;;  %v1021_v18 = vpop.f32.mrb[40].mxu0  ;;  %v5268_v7 = vpack.c.bf16 %v1335_v0, %v1331_v54 }
 0x173   : > { %v1022_v20 = vadd.f32 %v1021_v18, %v4957_v39  ;;  %v1023_v21 = vpop.f32.mrb[41].mxu0  ;;  %v5271_v11 = vpack.c.bf16 %v1336_v3, %v1332_v59 }
 0x174   : > { %v1024_v24 = vadd.f32 %v1023_v21, %v4962_v40  ;;  %v1025_v25 = vpop.f32.mrb[42].mxu0  ;;  %2505 = vmatprep.mubr.bf16.mxu0 %v1438_v17  ;;  %2891 = vmatprep.mubr.bf16.mxu1 %v1438_v17 }
 0x175   : > { %v1026_v30 = vadd.f32 %v1025_v25, %v4957_v39  ;;  %v1027_v31 = vpop.f32.mrb[43].mxu0  ;;  %2506 = vmatmul.mubr.bf16.gmra.mrb[100].mxu0 %v1437_v13  ;;  %2892 = vmatmul.mubr.bf16.gmra.mrb[100].mxu1 %v1437_v13  ;;  %v1353_v45 = vmax.f32 %v1022_v20, 0.0  ;;  %v1194_v13 = vpop.f32.mrb[32].mxu1 }
 0x176   : > { %v1028_v42 = vadd.f32 %v1027_v31, %v4962_v40  ;;  %v1354_v50 = vmax.f32 %v1024_v24, 0.0  ;;  %v1195_v16 = vadd.f32 %v1194_v13, %v5035_v46  ;;  %v1196_v17 = vpop.f32.mrb[33].mxu1 }
 0x177   : > { %v1357_v47 = vmax.f32 %v1026_v30, 0.0  ;;  %v1197_v20 = vadd.f32 %v1196_v17, %v5047_v51  ;;  %v1198_v21 = vpop.f32.mrb[34].mxu1 }
 0x178   : > { %v1358_v53 = vmax.f32 %v1028_v42, 0.0  ;;  %v1339_v25 = vmax.f32 %v1195_v16, 0.0  ;;  %v1199_v30 = vadd.f32 %v1198_v21, %v5035_v46  ;;  %v1200_v31 = vpop.f32.mrb[35].mxu1 }
 0x179   : > { %v1441_v37 = vpack.c.bf16 %v1357_v47, %v1353_v45  ;;  %v1340_v42 = vmax.f32 %v1197_v20, 0.0  ;;  %v1201_v43 = vadd.f32 %v1200_v31, %v5047_v51  ;;  %v1204_v61 = vpop.f32.mrb[36].mxu1 }
 0x17a   : > { %v1442_v62 = vpack.c.bf16 %v1358_v53, %v1354_v50  ;;  %v1031_v63 = vpop.f32.mrb[44].mxu0  ;;  %v1343_v47 = vmax.f32 %v1199_v30, 0.0  ;;  %v1206_v0 = vpop.f32.mrb[37].mxu1 }
 0x17b   : > { %v1032_v1 = vadd.f32 %v1031_v63, %v4957_v39  ;;  %v1033_v2 = vpop.f32.mrb[45].mxu0  ;;  %v1344_v50 = vmax.f32 %v1201_v43, 0.0  ;;  %v1205_v63 = vadd.f32 %v1204_v61, %v5035_v46  ;;  %v1207_v3 = vadd.f32 %v1206_v0, %v5047_v51 }
 0x17c   : > { %v1034_v5 = vadd.f32 %v1033_v2, %v4962_v40  ;;  %v1035_v6 = vpop.f32.mrb[46].mxu0  ;;  %2515 = vmatprep.mubr.bf16.mxu0 %v1442_v62  ;;  %2901 = vmatprep.mubr.bf16.mxu1 %v1442_v62  ;;  %v5280_v55 = vpack.c.bf16 %v1343_v47, %v1339_v25 }
 0x17d   : > { %v1036_v9 = vadd.f32 %v1035_v6, %v4957_v39  ;;  %v1037_v10 = vpop.f32.mrb[47].mxu0  ;;  %2516 = vmatmul.mubr.bf16.gmra.mrb[104].mxu0 %v1441_v37  ;;  %2902 = vmatmul.mubr.bf16.gmra.mrb[104].mxu1 %v1441_v37  ;;  %v1361_v18 = vmax.f32 %v1032_v1, 0.0  ;;  %v5283_v59 = vpack.c.bf16 %v1344_v50, %v1340_v42  ;;  %v1348_v17 = vmax.f32 %v1207_v3, 0.0 }
 0x17e   : > { %v1038_v14 = vadd.f32 %v1037_v10, %v4962_v40  ;;  %v1362_v22 = vmax.f32 %v1034_v5, 0.0  ;;  %v1208_v5 = vpop.f32.mrb[38].mxu1  ;;  %v1347_v10 = vmax.f32 %v1205_v63, 0.0 }
 0x17f   : > { %v1365_v19 = vmax.f32 %v1036_v9, 0.0  ;;  %v1209_v13 = vadd.f32 %v1208_v5, %v5035_v46 }
 0x180   : > { %v1366_v24 = vmax.f32 %v1038_v14, 0.0  ;;  %v1210_v14 = vpop.f32.mrb[39].mxu1 }
 0x181   : > { %v1445_v41 = vpack.c.bf16 %v1365_v19, %v1361_v18  ;;  %v1211_v18 = vadd.f32 %v1210_v14, %v5047_v51  ;;  %v1351_v21 = vmax.f32 %v1209_v13, 0.0 }
 0x182   : > { %v1446_v44 = vpack.c.bf16 %v1366_v24, %v1362_v22  ;;  %v1041_v45 = vpop.f32.mrb[48].mxu0 }
 0x183   : > { %v1042_v48 = vadd.f32 %v1041_v45, %v4957_v39  ;;  %v1043_v49 = vpop.f32.mrb[49].mxu0  ;;  %v1352_v25 = vmax.f32 %v1211_v18, 0.0  ;;  %v1214_v45 = vpop.f32.mrb[40].mxu1 }
 0x184   : > { %v1044_v53 = vadd.f32 %v1043_v49, %v4962_v40  ;;  %v1045_v54 = vpop.f32.mrb[50].mxu0  ;;  %2525 = vmatprep.mubr.bf16.mxu0 %v1446_v44  ;;  %2911 = vmatprep.mubr.bf16.mxu1 %v1446_v44  ;;  %v1216_v49 = vpop.f32.mrb[41].mxu1 }
 0x185   : > { %v1046_v57 = vadd.f32 %v1045_v54, %v4957_v39  ;;  %v1047_v37 = vpop.f32.mrb[51].mxu0  ;;  %2526 = vmatmul.mubr.bf16.gmra.mrb[108].mxu0 %v1445_v41  ;;  %2912 = vmatmul.mubr.bf16.gmra.mrb[108].mxu1 %v1445_v41  ;;  %v1369_v1 = vmax.f32 %v1042_v48, 0.0  ;;  %v5292_v41 = vpack.c.bf16 %v1351_v21, %v1347_v10  ;;  %v5295_v44 = vpack.c.bf16 %v1352_v25, %v1348_v17 }
 0x186   : > { %v1048_v62 = vadd.f32 %v1047_v37, %v4962_v40  ;;  %v1370_v6 = vmax.f32 %v1044_v53, 0.0  ;;  %v1215_v48 = vadd.f32 %v1214_v45, %v5035_v46  ;;  %v1217_v54 = vadd.f32 %v1216_v49, %v5047_v51 }
 0x187   : > { %v1373_v2 = vmax.f32 %v1046_v57, 0.0  ;;  %v1218_v57 = vpop.f32.mrb[42].mxu1 }
 0x188   : > { %v1374_v9 = vmax.f32 %v1048_v62, 0.0  ;;  %v1355_v62 = vmax.f32 %v1215_v48, 0.0  ;;  %v1219_v63 = vadd.f32 %v1218_v57, %v5035_v46  ;;  %v1220_v0 = vpop.f32.mrb[43].mxu1 }
 0x189   : > { %v1449_v16 = vpack.c.bf16 %v1373_v2, %v1369_v1  ;;  %v1356_v2 = vmax.f32 %v1217_v54, 0.0  ;;  %v1221_v3 = vadd.f32 %v1220_v0, %v5047_v51 }
 0x18a   : > { %v1450_v19 = vpack.c.bf16 %v1374_v9, %v1370_v6  ;;  %v1051_v20 = vpop.f32.mrb[52].mxu0  ;;  %v1359_v9 = vmax.f32 %v1219_v63, 0.0 }
 0x18b   : > { %v1052_v22 = vadd.f32 %v1051_v20, %v4957_v39  ;;  %v1053_v24 = vpop.f32.mrb[53].mxu0  ;;  %v1360_v14 = vmax.f32 %v1221_v3, 0.0 }
 0x18c   : > { %v1054_v30 = vadd.f32 %v1053_v24, %v4962_v40  ;;  %v1055_v31 = vpop.f32.mrb[54].mxu0  ;;  %2535 = vmatprep.mubr.bf16.mxu0 %v1450_v19  ;;  %2921 = vmatprep.mubr.bf16.mxu1 %v1450_v19  ;;  %v5304_v18 = vpack.c.bf16 %v1359_v9, %v1355_v62 }
 0x18d   : > { %v1056_v42 = vadd.f32 %v1055_v31, %v4957_v39  ;;  %v1057_v43 = vpop.f32.mrb[55].mxu0  ;;  %2536 = vmatmul.mubr.bf16.gmra.mrb[112].mxu0 %v1449_v16  ;;  %2922 = vmatmul.mubr.bf16.gmra.mrb[112].mxu1 %v1449_v16  ;;  %v1377_v50 = vmax.f32 %v1052_v22, 0.0  ;;  %v5307_v21 = vpack.c.bf16 %v1360_v14, %v1356_v2  ;;  %v1224_v22 = vpop.f32.mrb[44].mxu1 }
 0x18e   : > { %v1058_v47 = vadd.f32 %v1057_v43, %v4962_v40  ;;  %v1378_v37 = vmax.f32 %v1054_v30, 0.0  ;;  %v1225_v25 = vadd.f32 %v1224_v22, %v5035_v46  ;;  %v1226_v30 = vpop.f32.mrb[45].mxu1 }
 0x18f   : > { %v1381_v53 = vmax.f32 %v1056_v42, 0.0  ;;  %v1227_v43 = vadd.f32 %v1226_v30, %v5047_v51  ;;  %v1228_v45 = vpop.f32.mrb[46].mxu1 }
 0x190   : > { %v1382_v61 = vmax.f32 %v1058_v47, 0.0  ;;  %v1363_v49 = vmax.f32 %v1225_v25, 0.0 }
 0x191   : > { %v1453_v1 = vpack.c.bf16 %v1381_v53, %v1377_v50  ;;  %v1229_v50 = vadd.f32 %v1228_v45, %v5035_v46  ;;  %v1230_v53 = vpop.f32.mrb[47].mxu1  ;;  %v1364_v57 = vmax.f32 %v1227_v43, 0.0 }
 0x192   : > { %v1454_v5 = vpack.c.bf16 %v1382_v61, %v1378_v37  ;;  %v1061_v6 = vpop.f32.mrb[56].mxu0  ;;  %v1231_v37 = vadd.f32 %v1230_v53, %v5047_v51  ;;  %v1234_v14 = vpop.f32.mrb[48].mxu1 }
 0x193   : > { %v1062_v10 = vadd.f32 %v1061_v6, %v4957_v39  ;;  %v1063_v13 = vpop.f32.mrb[57].mxu0  ;;  %v1367_v63 = vmax.f32 %v1229_v50, 0.0 }
 0x194   : > { %v1064_v16 = vadd.f32 %v1063_v13, %v4962_v40  ;;  %v1065_v17 = vpop.f32.mrb[58].mxu0  ;;  %2545 = vmatprep.mubr.bf16.mxu0 %v1454_v5  ;;  %2931 = vmatprep.mubr.bf16.mxu1 %v1454_v5  ;;  %v1368_v2 = vmax.f32 %v1231_v37, 0.0 }
 0x195   : > { %v1066_v19 = vadd.f32 %v1065_v17, %v4957_v39  ;;  %v1067_v20 = vpop.f32.mrb[59].mxu0  ;;  %2546 = vmatmul.mubr.bf16.gmra.mrb[116].mxu0 %v1453_v1  ;;  %2932 = vmatmul.mubr.bf16.gmra.mrb[116].mxu1 %v1453_v1  ;;  %v1385_v31 = vmax.f32 %v1062_v10, 0.0  ;;  %v5316_v6 = vpack.c.bf16 %v1367_v63, %v1363_v49  ;;  %v1235_v17 = vadd.f32 %v1234_v14, %v5035_v46 }
 0x196   : > { %v1068_v24 = vadd.f32 %v1067_v20, %v4962_v40  ;;  %v1386_v47 = vmax.f32 %v1064_v16, 0.0  ;;  %v5319_v13 = vpack.c.bf16 %v1368_v2, %v1364_v57 }
 0x197   : > { %v1389_v42 = vmax.f32 %v1066_v19, 0.0  ;;  %v1236_v19 = vpop.f32.mrb[49].mxu1 }
 0x198   : > { %v1390_v48 = vmax.f32 %v1068_v24, 0.0  ;;  %v1237_v24 = vadd.f32 %v1236_v19, %v5047_v51  ;;  %v1238_v25 = vpop.f32.mrb[50].mxu1 }
 0x199   : > { %v1457_v54 = vpack.c.bf16 %v1389_v42, %v1385_v31  ;;  %v1371_v42 = vmax.f32 %v1235_v17, 0.0  ;;  %v1240_v43 = vpop.f32.mrb[51].mxu1 }
 0x19a   : > { %v1458_v61 = vpack.c.bf16 %v1390_v48, %v1386_v47  ;;  %v1071_v62 = vpop.f32.mrb[60].mxu0  ;;  %v1372_v47 = vmax.f32 %v1237_v24, 0.0  ;;  %v1241_v48 = vadd.f32 %v1240_v43, %v5047_v51  ;;  %v1244_v57 = vpop.f32.mrb[52].mxu1 }
 0x19b   : > { %v1072_v0 = vadd.f32 %v1071_v62, %v4957_v39  ;;  %v1073_v1 = vpop.f32.mrb[61].mxu0  ;;  %v1245_v37 = vadd.f32 %v1244_v57, %v5035_v46 }
 0x19c   : > { %v1074_v3 = vadd.f32 %v1073_v1, %v4962_v40  ;;  %v1075_v5 = vpop.f32.mrb[62].mxu0  ;;  %2555 = vmatprep.mubr.bf16.mxu0 %v1458_v61  ;;  %2941 = vmatprep.mubr.bf16.mxu1 %v1458_v61  ;;  %v1376_v50 = vmax.f32 %v1241_v48, 0.0  ;;  %v1246_v61 = vpop.f32.mrb[53].mxu1 }
 0x19d   : > { %v1076_v9 = vadd.f32 %v1075_v5, %v4957_v39  ;;  %v1077_v10 = vpop.f32.mrb[63].mxu0  ;;  %2556 = vmatmul.mubr.bf16.gmra.mrb[120].mxu0 %v1457_v54  ;;  %2942 = vmatmul.mubr.bf16.gmra.mrb[120].mxu1 %v1457_v54  ;;  %v1393_v20 = vmax.f32 %v1072_v0, 0.0  ;;  %v1239_v39 = vadd.f32 %v1238_v25, %v5035_v46  ;;  %v1247_v62 = vadd.f32 %v1246_v61, %v5047_v51  ;;  %v1248_v63 = vpop.f32.mrb[54].mxu1 }
 0x19e   : > { %v1078_v16 = vadd.f32 %v1077_v10, %v4962_v40  ;;  %v1394_v30 = vmax.f32 %v1074_v3, 0.0  ;;  %v5328_v54 = vpack.c.bf16 %v1376_v50, %v1372_v47  ;;  %v1379_v0 = vmax.f32 %v1245_v37, 0.0  ;;  %v1250_v2 = vpop.f32.mrb[55].mxu1 }
 0x19f   : > { %v1397_v22 = vmax.f32 %v1076_v9, 0.0  ;;  %v1375_v40 = vmax.f32 %v1239_v39, 0.0  ;;  %v1249_v1 = vadd.f32 %v1248_v63, %v5035_v46  ;;  %v1380_v3 = vmax.f32 %v1247_v62, 0.0 }
 0x1a0   : > { %v1398_v31 = vmax.f32 %v1078_v16, 0.0  ;;  %v1251_v5 = vadd.f32 %v1250_v2, %v5047_v51  ;;  %v1254_v16 = vpop.f32.mrb[56].mxu1 }
 0x1a1   : > { %v1461_v45 = vpack.c.bf16 %v1397_v22, %v1393_v20  ;;  %v5326_v53 = vpack.c.bf16 %v1375_v40, %v1371_v42  ;;  %v1383_v9 = vmax.f32 %v1249_v1, 0.0  ;;  %v1255_v17 = vadd.f32 %v1254_v16, %v5035_v46  ;;  %v1256_v19 = vpop.f32.mrb[57].mxu1 }
 0x1a2   : > { %v1462_v49 = vpack.c.bf16 %v1398_v31, %v1394_v30  ;;  %v1384_v10 = vmax.f32 %v1251_v5, 0.0  ;;  %v1257_v20 = vadd.f32 %v1256_v19, %v5047_v51  ;;  %v1258_v22 = vpop.f32.mrb[58].mxu1 }
 0x1a3   : > { %v5336_v14 = vpack.c.bf16 %v1383_v9, %v1379_v0  ;;  %v1387_v24 = vmax.f32 %v1255_v17, 0.0  ;;  %v1259_v25 = vadd.f32 %v1258_v22, %v5035_v46  ;;  %v1260_v30 = vpop.f32.mrb[59].mxu1 }
 0x1a4   : > { %2565 = vmatprep.mubr.bf16.mxu0 %v1462_v49  ;;  %2951 = vmatprep.mubr.bf16.mxu1 %v1462_v49  ;;  %v1388_v31 = vmax.f32 %v1257_v20, 0.0 }
 0x1a5   : > { %2566 = vmatmul.mubr.bf16.gmra.mrb[124].mxu0 %v1461_v45  ;;  %2952 = vmatmul.mubr.bf16.gmra.mrb[124].mxu1 %v1461_v45  ;;  %v1391_v42 = vmax.f32 %v1259_v25, 0.0  ;;  %v1264_v45 = vpop.f32.mrb[60].mxu1 }
 0x1a6   : > { %2608 = vmatprep.mubr.bf16.mxu0 %v5088_v27  ;;  %2994 = vmatprep.mubr.bf16.mxu1 %v5088_v27  ;;  %v5340_v27 = vpack.c.bf16 %v1384_v10, %v1380_v3  ;;  %v1265_v47 = vadd.f32 %v1264_v45, %v5035_v46  ;;  %v1266_v48 = vpop.f32.mrb[61].mxu1 }
 0x1a7   : > { %v5348_v43 = vpack.c.bf16 %v1391_v42, %v1387_v24  ;;  %v1267_v49 = vadd.f32 %v1266_v48, %v5047_v51  ;;  %v1268_v40 = vpop.f32.mrb[62].mxu1 }
 0x1a8   : > { %v1395_v50 = vmax.f32 %v1265_v47, 0.0  ;;  %v1269_v57 = vadd.f32 %v1268_v40, %v5035_v46  ;;  %v1270_v37 = vpop.f32.mrb[63].mxu1  ;;  %v1721_v46 = vld [vmem:[%s5751_s4] sm:$0xf] }
 0x1a9   : > { %v1396_v61 = vmax.f32 %v1267_v49, 0.0 }
 0x1aa   : > { %v1399_v62 = vmax.f32 %v1269_v57, 0.0 }
 0x1ac   : > { %v1463_v0 = vpack.c.bf16 %v1399_v62, %v1395_v50 }
 0x1ad   : > { %2609 = vmatmul.mubr.bf16.vlgmr.msra.gmra.mrb[64].mxu0 %v5082_v23  ;;  %2995 = vmatmul.mubr.bf16.vlgmr.msra.gmra.mrb[64].mxu1 %v5082_v23  ;;  %v1261_v23 = vadd.f32 %v1260_v30, %v5047_v51 }
 0x1ae   : > { %2618 = vmatprep.mubr.bf16.mxu0 %v5124_v8  ;;  %3004 = vmatprep.mubr.bf16.mxu1 %v5124_v8 }
 0x1af   : > { %v1392_v39 = vmax.f32 %v1261_v23, 0.0 }
 0x1b1   : > { %v5352_v8 = vpack.c.bf16 %v1392_v39, %v1388_v31 }
 0x1b5   : > { %2619 = vmatmul.mubr.bf16.gmra.mrb[68].mxu0 %v5118_v4  ;;  %3005 = vmatmul.mubr.bf16.gmra.mrb[68].mxu1 %v5118_v4  ;;  %v1271_v4 = vadd.f32 %v1270_v37, %v5047_v51  ;;  %v5418_v51 = vrot.slane %v1721_v46, %v389_v36 }
 0x1b6   : > { %2628 = vmatprep.mubr.bf16.mxu0 %v5160_v56  ;;  %3014 = vmatprep.mubr.bf16.mxu1 %v5160_v56 }
 0x1b7   : > { %v1400_v63 = vmax.f32 %v1271_v4, 0.0 }
 0x1b9   : > { %v1464_v56 = vpack.c.bf16 %v1400_v63, %v1396_v61 }
 0x1bd   : > { %2629 = vmatmul.mubr.bf16.gmra.mrb[72].mxu0 %v5154_v52  ;;  %3015 = vmatmul.mubr.bf16.gmra.mrb[72].mxu1 %v5154_v52  ;;  %v5422_v52 = vrot.slane %v1721_v46, %v397_v28 }
 0x1be   : > { %2638 = vmatprep.mubr.bf16.mxu0 %v5196_v33  ;;  %3024 = vmatprep.mubr.bf16.mxu1 %v5196_v33  ;;  %v5430_v33 = vrot.slane %v1721_v46, %v401_v32 }
 0x1c5   : > { %2639 = vmatmul.mubr.bf16.gmra.mrb[76].mxu0 %v5190_v26  ;;  %3025 = vmatmul.mubr.bf16.gmra.mrb[76].mxu1 %v5190_v26  ;;  %v5426_v26 = vrot.slane %v1721_v46, %v393_v38 }
 0x1c6   : > { %2648 = vmatprep.mubr.bf16.mxu0 %v5229_v15  ;;  %3034 = vmatprep.mubr.bf16.mxu1 %v5229_v15 }
 0x1cd   : > { %2649 = vmatmul.mubr.bf16.gmra.mrb[80].mxu0 %v5226_v12  ;;  %3035 = vmatmul.mubr.bf16.gmra.mrb[80].mxu1 %v5226_v12 }
 0x1ce   : > { %2658 = vmatprep.mubr.bf16.mxu0 %v5247_v60  ;;  %3044 = vmatprep.mubr.bf16.mxu1 %v5247_v60 }
 0x1d5   : > { %2659 = vmatmul.mubr.bf16.gmra.mrb[84].mxu0 %v5244_v58  ;;  %3045 = vmatmul.mubr.bf16.gmra.mrb[84].mxu1 %v5244_v58 }
 0x1d6   : > { %2668 = vmatprep.mubr.bf16.mxu0 %v5259_v34  ;;  %3054 = vmatprep.mubr.bf16.mxu1 %v5259_v34 }
 0x1dd   : > { %2669 = vmatmul.mubr.bf16.gmra.mrb[88].mxu0 %v5256_v29  ;;  %3055 = vmatmul.mubr.bf16.gmra.mrb[88].mxu1 %v5256_v29 }
 0x1de   : > { %2678 = vmatprep.mubr.bf16.mxu0 %v5271_v11  ;;  %3064 = vmatprep.mubr.bf16.mxu1 %v5271_v11 }
 0x1e5   : > { %2679 = vmatmul.mubr.bf16.gmra.mrb[92].mxu0 %v5268_v7  ;;  %3065 = vmatmul.mubr.bf16.gmra.mrb[92].mxu1 %v5268_v7 }
 0x1e6   : > { %2688 = vmatprep.mubr.bf16.mxu0 %v5283_v59  ;;  %3074 = vmatprep.mubr.bf16.mxu1 %v5283_v59 }
 0x1ed   : > { %2689 = vmatmul.mubr.bf16.gmra.mrb[96].mxu0 %v5280_v55  ;;  %3075 = vmatmul.mubr.bf16.gmra.mrb[96].mxu1 %v5280_v55 }
 0x1ee   : > { %2698 = vmatprep.mubr.bf16.mxu0 %v5295_v44  ;;  %3084 = vmatprep.mubr.bf16.mxu1 %v5295_v44 }
 0x1f5   : > { %2699 = vmatmul.mubr.bf16.gmra.mrb[100].mxu0 %v5292_v41  ;;  %3085 = vmatmul.mubr.bf16.gmra.mrb[100].mxu1 %v5292_v41 }
 0x1f6   : > { %2708 = vmatprep.mubr.bf16.mxu0 %v5307_v21  ;;  %3094 = vmatprep.mubr.bf16.mxu1 %v5307_v21 }
 0x1fd   : > { %2709 = vmatmul.mubr.bf16.gmra.mrb[104].mxu0 %v5304_v18  ;;  %3095 = vmatmul.mubr.bf16.gmra.mrb[104].mxu1 %v5304_v18 }
 0x1fe   : > { %2718 = vmatprep.mubr.bf16.mxu0 %v5319_v13  ;;  %3104 = vmatprep.mubr.bf16.mxu1 %v5319_v13 }
 0x205   : > { %2719 = vmatmul.mubr.bf16.gmra.mrb[108].mxu0 %v5316_v6  ;;  %3105 = vmatmul.mubr.bf16.gmra.mrb[108].mxu1 %v5316_v6 }
 0x206   : > { %2728 = vmatprep.mubr.bf16.mxu0 %v5328_v54  ;;  %3114 = vmatprep.mubr.bf16.mxu1 %v5328_v54 }
 0x20d   : > { %2729 = vmatmul.mubr.bf16.gmra.mrb[112].mxu0 %v5326_v53  ;;  %3115 = vmatmul.mubr.bf16.gmra.mrb[112].mxu1 %v5326_v53 }
 0x20e   : > { %2738 = vmatprep.mubr.bf16.mxu0 %v5340_v27  ;;  %3124 = vmatprep.mubr.bf16.mxu1 %v5340_v27 }
 0x215   : > { %2739 = vmatmul.mubr.bf16.gmra.mrb[116].mxu0 %v5336_v14  ;;  %3125 = vmatmul.mubr.bf16.gmra.mrb[116].mxu1 %v5336_v14 }
 0x216   : > { %2748 = vmatprep.mubr.bf16.mxu0 %v5352_v8  ;;  %3134 = vmatprep.mubr.bf16.mxu1 %v5352_v8 }
 0x21d   : > { %2749 = vmatmul.mubr.bf16.gmra.mrb[120].mxu0 %v5348_v43  ;;  %3135 = vmatmul.mubr.bf16.gmra.mrb[120].mxu1 %v5348_v43 }
 0x21e   : > { %2758 = vmatprep.mubr.bf16.mxu0 %v1464_v56  ;;  %3144 = vmatprep.mubr.bf16.mxu1 %v1464_v56 }
 0x225   : > { %2759 = vmatmul.mubr.bf16.gmra.mrb[124].mxu0 %v1463_v0  ;;  %3145 = vmatmul.mubr.bf16.gmra.mrb[124].mxu1 %v1463_v0 }
 0x280   : > { %v2610_v12 = vpop.f32.mrb[64].mxu0  ;;  %v2996_v15 = vpop.f32.mrb[64].mxu1 }
 0x281   : > { %v3644_v58 = vadd.f32 %v2610_v12, %v5418_v51  ;;  %v3708_v60 = vadd.f32 %v2996_v15, %v5422_v52  ;;  %v2612_v36 = vpop.f32.mrb[65].mxu0  ;;  %v2998_v29 = vpop.f32.mrb[65].mxu1 }
 0x282   : > { %v3645_v34 = vadd.f32 %v2612_v36, %v5426_v26  ;;  %v3709_v28 = vadd.f32 %v2998_v29, %v5430_v33  ;;  %v2614_v7 = vpop.f32.mrb[66].mxu0  ;;  %v3000_v11 = vpop.f32.mrb[66].mxu1 }
 0x283   : > { %3155 = vst [vmem:[%s5436_s13] sm:$0xff] %v3644_v58  ;;  %3157 = vst [vmem:[%s5436_s13 + $0x10] sm:$0xff] %v3708_v60  ;;  %v3646_v35 = vadd.f32 %v2614_v7, %v5418_v51  ;;  %v3710_v38 = vadd.f32 %v3000_v11, %v5422_v52  ;;  %v2616_v32 = vpop.f32.mrb[67].mxu0  ;;  %v3002_v55 = vpop.f32.mrb[67].mxu1 }
 0x284   : > { %3156 = vst [vmem:[%s5436_s13 + $0x8] sm:$0xff] %v3645_v34  ;;  %3158 = vst [vmem:[%s5436_s13 + $0x18] sm:$0xff] %v3709_v28  ;;  %v3647_v59 = vadd.f32 %v2616_v32, %v5426_v26  ;;  %v3711_v41 = vadd.f32 %v3002_v55, %v5430_v33 }
 0x285   : > { %3159 = vst [vmem:[%s5436_s13 + $0x20] sm:$0xff] %v3646_v35  ;;  %3161 = vst [vmem:[%s5436_s13 + $0x30] sm:$0xff] %v3710_v38 }
 0x286   : > { %3160 = vst [vmem:[%s5436_s13 + $0x28] sm:$0xff] %v3647_v59  ;;  %3162 = vst [vmem:[%s5436_s13 + $0x38] sm:$0xff] %v3711_v41 }
 0x288   : > { %v2620_v44 = vpop.f32.mrb[68].mxu0  ;;  %v3006_v18 = vpop.f32.mrb[68].mxu1 }
 0x289   : > { %v3648_v21 = vadd.f32 %v2620_v44, %v5418_v51  ;;  %v3712_v6 = vadd.f32 %v3006_v18, %v5422_v52  ;;  %v2622_v13 = vpop.f32.mrb[69].mxu0  ;;  %v3008_v53 = vpop.f32.mrb[69].mxu1 }
 0x28a   : > { %v3649_v54 = vadd.f32 %v2622_v13, %v5426_v26  ;;  %v3713_v1 = vadd.f32 %v3008_v53, %v5430_v33  ;;  %v2624_v2 = vpop.f32.mrb[70].mxu0  ;;  %v3010_v3 = vpop.f32.mrb[70].mxu1 }
 0x28b   : > { %3163 = vst [vmem:[%s5436_s13 + $0x40] sm:$0xff] %v3648_v21  ;;  %3165 = vst [vmem:[%s5436_s13 + $0x50] sm:$0xff] %v3712_v6  ;;  %v3650_v5 = vadd.f32 %v2624_v2, %v5418_v51  ;;  %v3714_v9 = vadd.f32 %v3010_v3, %v5422_v52  ;;  %v2626_v10 = vpop.f32.mrb[71].mxu0  ;;  %v3012_v14 = vpop.f32.mrb[71].mxu1 }
 0x28c   : > { %3164 = vst [vmem:[%s5436_s13 + $0x48] sm:$0xff] %v3649_v54  ;;  %3166 = vst [vmem:[%s5436_s13 + $0x58] sm:$0xff] %v3713_v1  ;;  %v3651_v27 = vadd.f32 %v2626_v10, %v5426_v26  ;;  %v3715_v16 = vadd.f32 %v3012_v14, %v5430_v33 }
 0x28d   : > { %3167 = vst [vmem:[%s5436_s13 + $0x60] sm:$0xff] %v3650_v5  ;;  %3169 = vst [vmem:[%s5436_s13 + $0x70] sm:$0xff] %v3714_v9 }
 0x28e   : > { %3168 = vst [vmem:[%s5436_s13 + $0x68] sm:$0xff] %v3651_v27  ;;  %3170 = vst [vmem:[%s5436_s13 + $0x78] sm:$0xff] %v3715_v16 }
 0x290   : > { %v2630_v17 = vpop.f32.mrb[72].mxu0  ;;  %v3016_v19 = vpop.f32.mrb[72].mxu1 }
 0x291   : > { %v3652_v20 = vadd.f32 %v2630_v17, %v5418_v51  ;;  %v3716_v22 = vadd.f32 %v3016_v19, %v5422_v52  ;;  %v2632_v24 = vpop.f32.mrb[73].mxu0  ;;  %v3018_v25 = vpop.f32.mrb[73].mxu1 }
 0x292   : > { %v3653_v30 = vadd.f32 %v2632_v24, %v5426_v26  ;;  %v3717_v31 = vadd.f32 %v3018_v25, %v5430_v33  ;;  %v2634_v23 = vpop.f32.mrb[74].mxu0  ;;  %v3020_v42 = vpop.f32.mrb[74].mxu1 }
 0x293   : > { %3171 = vst [vmem:[%s5436_s13 + $0x80] sm:$0xff] %v3652_v20  ;;  %3173 = vst [vmem:[%s5436_s13 + $0x90] sm:$0xff] %v3716_v22  ;;  %v3654_v39 = vadd.f32 %v2634_v23, %v5418_v51  ;;  %v3718_v43 = vadd.f32 %v3020_v42, %v5422_v52  ;;  %v2636_v8 = vpop.f32.mrb[75].mxu0  ;;  %v3022_v45 = vpop.f32.mrb[75].mxu1 }
 0x294   : > { %3172 = vst [vmem:[%s5436_s13 + $0x88] sm:$0xff] %v3653_v30  ;;  %3174 = vst [vmem:[%s5436_s13 + $0x98] sm:$0xff] %v3717_v31  ;;  %v3655_v47 = vadd.f32 %v2636_v8, %v5426_v26  ;;  %v3719_v48 = vadd.f32 %v3022_v45, %v5430_v33 }
 0x295   : > { %3175 = vst [vmem:[%s5436_s13 + $0xa0] sm:$0xff] %v3654_v39  ;;  %3177 = vst [vmem:[%s5436_s13 + $0xb0] sm:$0xff] %v3718_v43 }
 0x296   : > { %3176 = vst [vmem:[%s5436_s13 + $0xa8] sm:$0xff] %v3655_v47  ;;  %3178 = vst [vmem:[%s5436_s13 + $0xb8] sm:$0xff] %v3719_v48 }
 0x298   : > { %v2640_v49 = vpop.f32.mrb[76].mxu0  ;;  %v3026_v40 = vpop.f32.mrb[76].mxu1 }
 0x299   : > { %v3656_v50 = vadd.f32 %v2640_v49, %v5418_v51  ;;  %v3720_v57 = vadd.f32 %v3026_v40, %v5422_v52  ;;  %v2642_v37 = vpop.f32.mrb[77].mxu0  ;;  %v3028_v61 = vpop.f32.mrb[77].mxu1 }
 0x29a   : > { %v3657_v4 = vadd.f32 %v2642_v37, %v5426_v26  ;;  %v3721_v62 = vadd.f32 %v3028_v61, %v5430_v33  ;;  %v2644_v63 = vpop.f32.mrb[78].mxu0  ;;  %v3030_v0 = vpop.f32.mrb[78].mxu1 }
 0x29b   : > { %3179 = vst [vmem:[%s5436_s13 + $0xc0] sm:$0xff] %v3656_v50  ;;  %3181 = vst [vmem:[%s5436_s13 + $0xd0] sm:$0xff] %v3720_v57  ;;  %v3658_v56 = vadd.f32 %v2644_v63, %v5418_v51  ;;  %v3722_v46 = vadd.f32 %v3030_v0, %v5422_v52  ;;  %v2646_v12 = vpop.f32.mrb[79].mxu0  ;;  %v3032_v15 = vpop.f32.mrb[79].mxu1 }
 0x29c   : > { %3180 = vst [vmem:[%s5436_s13 + $0xc8] sm:$0xff] %v3657_v4  ;;  %3182 = vst [vmem:[%s5436_s13 + $0xd8] sm:$0xff] %v3721_v62  ;;  %v3659_v58 = vadd.f32 %v2646_v12, %v5426_v26  ;;  %v3723_v60 = vadd.f32 %v3032_v15, %v5430_v33 }
 0x29d   : > { %3183 = vst [vmem:[%s5436_s13 + $0xe0] sm:$0xff] %v3658_v56  ;;  %3185 = vst [vmem:[%s5436_s13 + $0xf0] sm:$0xff] %v3722_v46 }
 0x29e   : > { %3184 = vst [vmem:[%s5436_s13 + $0xe8] sm:$0xff] %v3659_v58  ;;  %3186 = vst [vmem:[%s5436_s13 + $0xf8] sm:$0xff] %v3723_v60 }
 0x2a0   : > { %v2650_v36 = vpop.f32.mrb[80].mxu0  ;;  %v3036_v29 = vpop.f32.mrb[80].mxu1 }
 0x2a1   : > { %v3660_v34 = vadd.f32 %v2650_v36, %v5418_v51  ;;  %v3724_v28 = vadd.f32 %v3036_v29, %v5422_v52  ;;  %v2652_v7 = vpop.f32.mrb[81].mxu0  ;;  %v3038_v11 = vpop.f32.mrb[81].mxu1 }
 0x2a2   : > { %v3661_v35 = vadd.f32 %v2652_v7, %v5426_v26  ;;  %v3725_v38 = vadd.f32 %v3038_v11, %v5430_v33  ;;  %v2654_v32 = vpop.f32.mrb[82].mxu0  ;;  %v3040_v55 = vpop.f32.mrb[82].mxu1 }
 0x2a3   : > { %3187 = vst [vmem:[%s5436_s13 + $0x100] sm:$0xff] %v3660_v34  ;;  %3189 = vst [vmem:[%s5436_s13 + $0x110] sm:$0xff] %v3724_v28  ;;  %v3662_v59 = vadd.f32 %v2654_v32, %v5418_v51  ;;  %v3726_v41 = vadd.f32 %v3040_v55, %v5422_v52  ;;  %v2656_v44 = vpop.f32.mrb[83].mxu0  ;;  %v3042_v18 = vpop.f32.mrb[83].mxu1 }
 0x2a4   : > { %3188 = vst [vmem:[%s5436_s13 + $0x108] sm:$0xff] %v3661_v35  ;;  %3190 = vst [vmem:[%s5436_s13 + $0x118] sm:$0xff] %v3725_v38  ;;  %v3663_v21 = vadd.f32 %v2656_v44, %v5426_v26  ;;  %v3727_v6 = vadd.f32 %v3042_v18, %v5430_v33 }
 0x2a5   : > { %3191 = vst [vmem:[%s5436_s13 + $0x120] sm:$0xff] %v3662_v59  ;;  %3193 = vst [vmem:[%s5436_s13 + $0x130] sm:$0xff] %v3726_v41 }
 0x2a6   : > { %3192 = vst [vmem:[%s5436_s13 + $0x128] sm:$0xff] %v3663_v21  ;;  %3194 = vst [vmem:[%s5436_s13 + $0x138] sm:$0xff] %v3727_v6 }
 0x2a8   : > { %v2660_v13 = vpop.f32.mrb[84].mxu0  ;;  %v3046_v53 = vpop.f32.mrb[84].mxu1 }
 0x2a9   : > { %v3664_v54 = vadd.f32 %v2660_v13, %v5418_v51  ;;  %v3728_v1 = vadd.f32 %v3046_v53, %v5422_v52  ;;  %v2662_v2 = vpop.f32.mrb[85].mxu0  ;;  %v3048_v3 = vpop.f32.mrb[85].mxu1 }
 0x2aa   : > { %v3665_v5 = vadd.f32 %v2662_v2, %v5426_v26  ;;  %v3729_v9 = vadd.f32 %v3048_v3, %v5430_v33  ;;  %v2664_v10 = vpop.f32.mrb[86].mxu0  ;;  %v3050_v14 = vpop.f32.mrb[86].mxu1 }
 0x2ab   : > { %3195 = vst [vmem:[%s5436_s13 + $0x140] sm:$0xff] %v3664_v54  ;;  %3197 = vst [vmem:[%s5436_s13 + $0x150] sm:$0xff] %v3728_v1  ;;  %v3666_v27 = vadd.f32 %v2664_v10, %v5418_v51  ;;  %v3730_v16 = vadd.f32 %v3050_v14, %v5422_v52  ;;  %v2666_v17 = vpop.f32.mrb[87].mxu0  ;;  %v3052_v19 = vpop.f32.mrb[87].mxu1 }
 0x2ac   : > { %3196 = vst [vmem:[%s5436_s13 + $0x148] sm:$0xff] %v3665_v5  ;;  %3198 = vst [vmem:[%s5436_s13 + $0x158] sm:$0xff] %v3729_v9  ;;  %v3667_v20 = vadd.f32 %v2666_v17, %v5426_v26  ;;  %v3731_v22 = vadd.f32 %v3052_v19, %v5430_v33 }
 0x2ad   : > { %3199 = vst [vmem:[%s5436_s13 + $0x160] sm:$0xff] %v3666_v27  ;;  %3201 = vst [vmem:[%s5436_s13 + $0x170] sm:$0xff] %v3730_v16 }
 0x2ae   : > { %3200 = vst [vmem:[%s5436_s13 + $0x168] sm:$0xff] %v3667_v20  ;;  %3202 = vst [vmem:[%s5436_s13 + $0x178] sm:$0xff] %v3731_v22 }
 0x2b0   : > { %v2670_v24 = vpop.f32.mrb[88].mxu0  ;;  %v3056_v25 = vpop.f32.mrb[88].mxu1 }
 0x2b1   : > { %v3668_v30 = vadd.f32 %v2670_v24, %v5418_v51  ;;  %v3732_v31 = vadd.f32 %v3056_v25, %v5422_v52  ;;  %v2672_v23 = vpop.f32.mrb[89].mxu0  ;;  %v3058_v42 = vpop.f32.mrb[89].mxu1 }
 0x2b2   : > { %v3669_v39 = vadd.f32 %v2672_v23, %v5426_v26  ;;  %v3733_v43 = vadd.f32 %v3058_v42, %v5430_v33  ;;  %v2674_v8 = vpop.f32.mrb[90].mxu0  ;;  %v3060_v45 = vpop.f32.mrb[90].mxu1 }
 0x2b3   : > { %3203 = vst [vmem:[%s5436_s13 + $0x180] sm:$0xff] %v3668_v30  ;;  %3205 = vst [vmem:[%s5436_s13 + $0x190] sm:$0xff] %v3732_v31  ;;  %v3670_v47 = vadd.f32 %v2674_v8, %v5418_v51  ;;  %v3734_v48 = vadd.f32 %v3060_v45, %v5422_v52  ;;  %v2676_v49 = vpop.f32.mrb[91].mxu0  ;;  %v3062_v40 = vpop.f32.mrb[91].mxu1 }
 0x2b4   : > { %3204 = vst [vmem:[%s5436_s13 + $0x188] sm:$0xff] %v3669_v39  ;;  %3206 = vst [vmem:[%s5436_s13 + $0x198] sm:$0xff] %v3733_v43  ;;  %v3671_v50 = vadd.f32 %v2676_v49, %v5426_v26  ;;  %v3735_v57 = vadd.f32 %v3062_v40, %v5430_v33 }
 0x2b5   : > { %3207 = vst [vmem:[%s5436_s13 + $0x1a0] sm:$0xff] %v3670_v47  ;;  %3209 = vst [vmem:[%s5436_s13 + $0x1b0] sm:$0xff] %v3734_v48 }
 0x2b6   : > { %3208 = vst [vmem:[%s5436_s13 + $0x1a8] sm:$0xff] %v3671_v50  ;;  %3210 = vst [vmem:[%s5436_s13 + $0x1b8] sm:$0xff] %v3735_v57 }
 0x2b8   : > { %v2680_v37 = vpop.f32.mrb[92].mxu0  ;;  %v3066_v61 = vpop.f32.mrb[92].mxu1 }
 0x2b9   : > { %v3672_v4 = vadd.f32 %v2680_v37, %v5418_v51  ;;  %v3736_v62 = vadd.f32 %v3066_v61, %v5422_v52  ;;  %v2682_v63 = vpop.f32.mrb[93].mxu0  ;;  %v3068_v0 = vpop.f32.mrb[93].mxu1 }
 0x2ba   : > { %v3673_v56 = vadd.f32 %v2682_v63, %v5426_v26  ;;  %v3737_v46 = vadd.f32 %v3068_v0, %v5430_v33  ;;  %v2684_v12 = vpop.f32.mrb[94].mxu0  ;;  %v3070_v15 = vpop.f32.mrb[94].mxu1 }
 0x2bb   : > { %3211 = vst [vmem:[%s5436_s13 + $0x1c0] sm:$0xff] %v3672_v4  ;;  %3213 = vst [vmem:[%s5436_s13 + $0x1d0] sm:$0xff] %v3736_v62  ;;  %v3674_v58 = vadd.f32 %v2684_v12, %v5418_v51  ;;  %v3738_v60 = vadd.f32 %v3070_v15, %v5422_v52  ;;  %v2686_v36 = vpop.f32.mrb[95].mxu0  ;;  %v3072_v29 = vpop.f32.mrb[95].mxu1 }
 0x2bc   : > { %3212 = vst [vmem:[%s5436_s13 + $0x1c8] sm:$0xff] %v3673_v56  ;;  %3214 = vst [vmem:[%s5436_s13 + $0x1d8] sm:$0xff] %v3737_v46  ;;  %v3675_v34 = vadd.f32 %v2686_v36, %v5426_v26  ;;  %v3739_v28 = vadd.f32 %v3072_v29, %v5430_v33 }
 0x2bd   : > { %3215 = vst [vmem:[%s5436_s13 + $0x1e0] sm:$0xff] %v3674_v58  ;;  %3217 = vst [vmem:[%s5436_s13 + $0x1f0] sm:$0xff] %v3738_v60 }
 0x2be   : > { %3216 = vst [vmem:[%s5436_s13 + $0x1e8] sm:$0xff] %v3675_v34  ;;  %3218 = vst [vmem:[%s5436_s13 + $0x1f8] sm:$0xff] %v3739_v28 }
 0x2c0   : > { %v2690_v7 = vpop.f32.mrb[96].mxu0  ;;  %v3076_v11 = vpop.f32.mrb[96].mxu1 }
 0x2c1   : > { %v3676_v35 = vadd.f32 %v2690_v7, %v5418_v51  ;;  %v3740_v38 = vadd.f32 %v3076_v11, %v5422_v52  ;;  %v2692_v32 = vpop.f32.mrb[97].mxu0  ;;  %v3078_v55 = vpop.f32.mrb[97].mxu1 }
 0x2c2   : > { %v3677_v59 = vadd.f32 %v2692_v32, %v5426_v26  ;;  %v3741_v41 = vadd.f32 %v3078_v55, %v5430_v33  ;;  %v2694_v44 = vpop.f32.mrb[98].mxu0  ;;  %v3080_v18 = vpop.f32.mrb[98].mxu1 }
 0x2c3   : > { %3219 = vst [vmem:[%s5436_s13 + $0x200] sm:$0xff] %v3676_v35  ;;  %3221 = vst [vmem:[%s5436_s13 + $0x210] sm:$0xff] %v3740_v38  ;;  %v3678_v21 = vadd.f32 %v2694_v44, %v5418_v51  ;;  %v3742_v6 = vadd.f32 %v3080_v18, %v5422_v52  ;;  %v2696_v13 = vpop.f32.mrb[99].mxu0  ;;  %v3082_v53 = vpop.f32.mrb[99].mxu1 }
 0x2c4   : > { %3220 = vst [vmem:[%s5436_s13 + $0x208] sm:$0xff] %v3677_v59  ;;  %3222 = vst [vmem:[%s5436_s13 + $0x218] sm:$0xff] %v3741_v41  ;;  %v3679_v54 = vadd.f32 %v2696_v13, %v5426_v26  ;;  %v3743_v1 = vadd.f32 %v3082_v53, %v5430_v33 }
 0x2c5   : > { %3223 = vst [vmem:[%s5436_s13 + $0x220] sm:$0xff] %v3678_v21  ;;  %3225 = vst [vmem:[%s5436_s13 + $0x230] sm:$0xff] %v3742_v6 }
 0x2c6   : > { %3224 = vst [vmem:[%s5436_s13 + $0x228] sm:$0xff] %v3679_v54  ;;  %3226 = vst [vmem:[%s5436_s13 + $0x238] sm:$0xff] %v3743_v1 }
 0x2c8   : > { %v2700_v2 = vpop.f32.mrb[100].mxu0  ;;  %v3086_v3 = vpop.f32.mrb[100].mxu1 }
 0x2c9   : > { %v3680_v5 = vadd.f32 %v2700_v2, %v5418_v51  ;;  %v3744_v9 = vadd.f32 %v3086_v3, %v5422_v52  ;;  %v2702_v10 = vpop.f32.mrb[101].mxu0  ;;  %v3088_v14 = vpop.f32.mrb[101].mxu1 }
 0x2ca   : > { %v3681_v27 = vadd.f32 %v2702_v10, %v5426_v26  ;;  %v3745_v16 = vadd.f32 %v3088_v14, %v5430_v33  ;;  %v2704_v17 = vpop.f32.mrb[102].mxu0  ;;  %v3090_v19 = vpop.f32.mrb[102].mxu1 }
 0x2cb   : > { %3227 = vst [vmem:[%s5436_s13 + $0x240] sm:$0xff] %v3680_v5  ;;  %3229 = vst [vmem:[%s5436_s13 + $0x250] sm:$0xff] %v3744_v9  ;;  %v3682_v20 = vadd.f32 %v2704_v17, %v5418_v51  ;;  %v3746_v22 = vadd.f32 %v3090_v19, %v5422_v52  ;;  %v2706_v24 = vpop.f32.mrb[103].mxu0  ;;  %v3092_v25 = vpop.f32.mrb[103].mxu1 }
 0x2cc   : > { %3228 = vst [vmem:[%s5436_s13 + $0x248] sm:$0xff] %v3681_v27  ;;  %3230 = vst [vmem:[%s5436_s13 + $0x258] sm:$0xff] %v3745_v16  ;;  %v3683_v30 = vadd.f32 %v2706_v24, %v5426_v26  ;;  %v3747_v31 = vadd.f32 %v3092_v25, %v5430_v33 }
 0x2cd   : > { %3231 = vst [vmem:[%s5436_s13 + $0x260] sm:$0xff] %v3682_v20  ;;  %3233 = vst [vmem:[%s5436_s13 + $0x270] sm:$0xff] %v3746_v22 }
 0x2ce   : > { %3232 = vst [vmem:[%s5436_s13 + $0x268] sm:$0xff] %v3683_v30  ;;  %3234 = vst [vmem:[%s5436_s13 + $0x278] sm:$0xff] %v3747_v31 }
 0x2d0   : > { %v2710_v23 = vpop.f32.mrb[104].mxu0  ;;  %v3096_v42 = vpop.f32.mrb[104].mxu1 }
 0x2d1   : > { %v3684_v39 = vadd.f32 %v2710_v23, %v5418_v51  ;;  %v3748_v43 = vadd.f32 %v3096_v42, %v5422_v52  ;;  %v2712_v8 = vpop.f32.mrb[105].mxu0  ;;  %v3098_v45 = vpop.f32.mrb[105].mxu1 }
 0x2d2   : > { %v3685_v47 = vadd.f32 %v2712_v8, %v5426_v26  ;;  %v3749_v48 = vadd.f32 %v3098_v45, %v5430_v33  ;;  %v2714_v49 = vpop.f32.mrb[106].mxu0  ;;  %v3100_v40 = vpop.f32.mrb[106].mxu1 }
 0x2d3   : > { %3235 = vst [vmem:[%s5436_s13 + $0x280] sm:$0xff] %v3684_v39  ;;  %3237 = vst [vmem:[%s5436_s13 + $0x290] sm:$0xff] %v3748_v43  ;;  %v3686_v50 = vadd.f32 %v2714_v49, %v5418_v51  ;;  %v3750_v57 = vadd.f32 %v3100_v40, %v5422_v52  ;;  %v2716_v37 = vpop.f32.mrb[107].mxu0  ;;  %v3102_v61 = vpop.f32.mrb[107].mxu1 }
 0x2d4   : > { %3236 = vst [vmem:[%s5436_s13 + $0x288] sm:$0xff] %v3685_v47  ;;  %3238 = vst [vmem:[%s5436_s13 + $0x298] sm:$0xff] %v3749_v48  ;;  %v3687_v4 = vadd.f32 %v2716_v37, %v5426_v26  ;;  %v3751_v62 = vadd.f32 %v3102_v61, %v5430_v33 }
 0x2d5   : > { %3239 = vst [vmem:[%s5436_s13 + $0x2a0] sm:$0xff] %v3686_v50  ;;  %3241 = vst [vmem:[%s5436_s13 + $0x2b0] sm:$0xff] %v3750_v57 }
 0x2d6   : > { %3240 = vst [vmem:[%s5436_s13 + $0x2a8] sm:$0xff] %v3687_v4  ;;  %3242 = vst [vmem:[%s5436_s13 + $0x2b8] sm:$0xff] %v3751_v62 }
 0x2d8   : > { %v2720_v63 = vpop.f32.mrb[108].mxu0  ;;  %v3106_v0 = vpop.f32.mrb[108].mxu1 }
 0x2d9   : > { %v3688_v56 = vadd.f32 %v2720_v63, %v5418_v51  ;;  %v3752_v46 = vadd.f32 %v3106_v0, %v5422_v52  ;;  %v2722_v12 = vpop.f32.mrb[109].mxu0  ;;  %v3108_v15 = vpop.f32.mrb[109].mxu1 }
 0x2da   : > { %v3689_v58 = vadd.f32 %v2722_v12, %v5426_v26  ;;  %v3753_v60 = vadd.f32 %v3108_v15, %v5430_v33  ;;  %v2724_v36 = vpop.f32.mrb[110].mxu0  ;;  %v3110_v29 = vpop.f32.mrb[110].mxu1 }
 0x2db   : > { %3243 = vst [vmem:[%s5436_s13 + $0x2c0] sm:$0xff] %v3688_v56  ;;  %3245 = vst [vmem:[%s5436_s13 + $0x2d0] sm:$0xff] %v3752_v46  ;;  %v3690_v34 = vadd.f32 %v2724_v36, %v5418_v51  ;;  %v3754_v28 = vadd.f32 %v3110_v29, %v5422_v52  ;;  %v2726_v7 = vpop.f32.mrb[111].mxu0  ;;  %v3112_v11 = vpop.f32.mrb[111].mxu1 }
 0x2dc   : > { %3244 = vst [vmem:[%s5436_s13 + $0x2c8] sm:$0xff] %v3689_v58  ;;  %3246 = vst [vmem:[%s5436_s13 + $0x2d8] sm:$0xff] %v3753_v60  ;;  %v3691_v35 = vadd.f32 %v2726_v7, %v5426_v26  ;;  %v3755_v38 = vadd.f32 %v3112_v11, %v5430_v33 }
 0x2dd   : > { %3247 = vst [vmem:[%s5436_s13 + $0x2e0] sm:$0xff] %v3690_v34  ;;  %3249 = vst [vmem:[%s5436_s13 + $0x2f0] sm:$0xff] %v3754_v28 }
 0x2de   : > { %3248 = vst [vmem:[%s5436_s13 + $0x2e8] sm:$0xff] %v3691_v35  ;;  %3250 = vst [vmem:[%s5436_s13 + $0x2f8] sm:$0xff] %v3755_v38 }
 0x2e0   : > { %v2730_v32 = vpop.f32.mrb[112].mxu0  ;;  %v3116_v55 = vpop.f32.mrb[112].mxu1 }
 0x2e1   : > { %v3692_v59 = vadd.f32 %v2730_v32, %v5418_v51  ;;  %v3756_v41 = vadd.f32 %v3116_v55, %v5422_v52  ;;  %v2732_v44 = vpop.f32.mrb[113].mxu0  ;;  %v3118_v18 = vpop.f32.mrb[113].mxu1 }
 0x2e2   : > { %v3693_v21 = vadd.f32 %v2732_v44, %v5426_v26  ;;  %v3757_v6 = vadd.f32 %v3118_v18, %v5430_v33  ;;  %v2734_v13 = vpop.f32.mrb[114].mxu0  ;;  %v3120_v53 = vpop.f32.mrb[114].mxu1 }
 0x2e3   : > { %3251 = vst [vmem:[%s5436_s13 + $0x300] sm:$0xff] %v3692_v59  ;;  %3253 = vst [vmem:[%s5436_s13 + $0x310] sm:$0xff] %v3756_v41  ;;  %v3694_v54 = vadd.f32 %v2734_v13, %v5418_v51  ;;  %v3758_v1 = vadd.f32 %v3120_v53, %v5422_v52  ;;  %v2736_v2 = vpop.f32.mrb[115].mxu0  ;;  %v3122_v3 = vpop.f32.mrb[115].mxu1 }
 0x2e4   : > { %3252 = vst [vmem:[%s5436_s13 + $0x308] sm:$0xff] %v3693_v21  ;;  %3254 = vst [vmem:[%s5436_s13 + $0x318] sm:$0xff] %v3757_v6  ;;  %v3695_v5 = vadd.f32 %v2736_v2, %v5426_v26  ;;  %v3759_v9 = vadd.f32 %v3122_v3, %v5430_v33 }
 0x2e5   : > { %3255 = vst [vmem:[%s5436_s13 + $0x320] sm:$0xff] %v3694_v54  ;;  %3257 = vst [vmem:[%s5436_s13 + $0x330] sm:$0xff] %v3758_v1 }
 0x2e6   : > { %3256 = vst [vmem:[%s5436_s13 + $0x328] sm:$0xff] %v3695_v5  ;;  %3258 = vst [vmem:[%s5436_s13 + $0x338] sm:$0xff] %v3759_v9 }
 0x2e8   : > { %v2740_v10 = vpop.f32.mrb[116].mxu0  ;;  %v3126_v14 = vpop.f32.mrb[116].mxu1 }
 0x2e9   : > { %v3696_v27 = vadd.f32 %v2740_v10, %v5418_v51  ;;  %v3760_v16 = vadd.f32 %v3126_v14, %v5422_v52  ;;  %v2742_v17 = vpop.f32.mrb[117].mxu0  ;;  %v3128_v19 = vpop.f32.mrb[117].mxu1 }
 0x2ea   : > { %v3697_v20 = vadd.f32 %v2742_v17, %v5426_v26  ;;  %v3761_v22 = vadd.f32 %v3128_v19, %v5430_v33  ;;  %v2744_v24 = vpop.f32.mrb[118].mxu0  ;;  %v3130_v25 = vpop.f32.mrb[118].mxu1 }
 0x2eb   : > { %3259 = vst [vmem:[%s5436_s13 + $0x340] sm:$0xff] %v3696_v27  ;;  %3261 = vst [vmem:[%s5436_s13 + $0x350] sm:$0xff] %v3760_v16  ;;  %v3698_v30 = vadd.f32 %v2744_v24, %v5418_v51  ;;  %v3762_v31 = vadd.f32 %v3130_v25, %v5422_v52  ;;  %v2746_v23 = vpop.f32.mrb[119].mxu0  ;;  %v3132_v42 = vpop.f32.mrb[119].mxu1 }
 0x2ec   : > { %3260 = vst [vmem:[%s5436_s13 + $0x348] sm:$0xff] %v3697_v20  ;;  %3262 = vst [vmem:[%s5436_s13 + $0x358] sm:$0xff] %v3761_v22  ;;  %v3699_v39 = vadd.f32 %v2746_v23, %v5426_v26  ;;  %v3763_v43 = vadd.f32 %v3132_v42, %v5430_v33 }
 0x2ed   : > { %3263 = vst [vmem:[%s5436_s13 + $0x360] sm:$0xff] %v3698_v30  ;;  %3265 = vst [vmem:[%s5436_s13 + $0x370] sm:$0xff] %v3762_v31 }
 0x2ee   : > { %3264 = vst [vmem:[%s5436_s13 + $0x368] sm:$0xff] %v3699_v39  ;;  %3266 = vst [vmem:[%s5436_s13 + $0x378] sm:$0xff] %v3763_v43 }
 0x2f0   : > { %v2750_v8 = vpop.f32.mrb[120].mxu0  ;;  %v3136_v45 = vpop.f32.mrb[120].mxu1 }
 0x2f1   : > { %v3700_v47 = vadd.f32 %v2750_v8, %v5418_v51  ;;  %v3764_v48 = vadd.f32 %v3136_v45, %v5422_v52  ;;  %v2752_v49 = vpop.f32.mrb[121].mxu0  ;;  %v3138_v40 = vpop.f32.mrb[121].mxu1 }
 0x2f2   : > { %v3701_v50 = vadd.f32 %v2752_v49, %v5426_v26  ;;  %v3765_v57 = vadd.f32 %v3138_v40, %v5430_v33  ;;  %v2754_v37 = vpop.f32.mrb[122].mxu0  ;;  %v3140_v61 = vpop.f32.mrb[122].mxu1 }
 0x2f3   : > { %3267 = vst [vmem:[%s5436_s13 + $0x380] sm:$0xff] %v3700_v47  ;;  %3269 = vst [vmem:[%s5436_s13 + $0x390] sm:$0xff] %v3764_v48  ;;  %v3702_v4 = vadd.f32 %v2754_v37, %v5418_v51  ;;  %v3766_v62 = vadd.f32 %v3140_v61, %v5422_v52  ;;  %v2756_v63 = vpop.f32.mrb[123].mxu0  ;;  %v3142_v0 = vpop.f32.mrb[123].mxu1 }
 0x2f4   : > { %3268 = vst [vmem:[%s5436_s13 + $0x388] sm:$0xff] %v3701_v50  ;;  %3270 = vst [vmem:[%s5436_s13 + $0x398] sm:$0xff] %v3765_v57  ;;  %v3703_v56 = vadd.f32 %v2756_v63, %v5426_v26  ;;  %v3767_v46 = vadd.f32 %v3142_v0, %v5430_v33 }
 0x2f5   : > { %3271 = vst [vmem:[%s5436_s13 + $0x3a0] sm:$0xff] %v3702_v4  ;;  %3273 = vst [vmem:[%s5436_s13 + $0x3b0] sm:$0xff] %v3766_v62 }
 0x2f6   : > { %3272 = vst [vmem:[%s5436_s13 + $0x3a8] sm:$0xff] %v3703_v56  ;;  %3274 = vst [vmem:[%s5436_s13 + $0x3b8] sm:$0xff] %v3767_v46 }
 0x2f8   : > { %v2760_v12 = vpop.f32.mrb[124].mxu0  ;;  %v3146_v15 = vpop.f32.mrb[124].mxu1 }
 0x2f9   : > { %v3704_v58 = vadd.f32 %v2760_v12, %v5418_v51  ;;  %v3768_v60 = vadd.f32 %v3146_v15, %v5422_v52  ;;  %v2762_v36 = vpop.f32.mrb[125].mxu0  ;;  %v3148_v29 = vpop.f32.mrb[125].mxu1 }
 0x2fa   : > { %v3705_v34 = vadd.f32 %v2762_v36, %v5426_v26  ;;  %v3769_v28 = vadd.f32 %v3148_v29, %v5430_v33  ;;  %v2764_v7 = vpop.f32.mrb[126].mxu0  ;;  %v3150_v11 = vpop.f32.mrb[126].mxu1 }
 0x2fb   : > { %3275 = vst [vmem:[%s5436_s13 + $0x3c0] sm:$0xff] %v3704_v58  ;;  %3277 = vst [vmem:[%s5436_s13 + $0x3d0] sm:$0xff] %v3768_v60  ;;  %v3706_v35 = vadd.f32 %v2764_v7, %v5418_v51  ;;  %v3770_v38 = vadd.f32 %v3150_v11, %v5422_v52  ;;  %v2766_v32 = vpop.f32.mrb[127].mxu0  ;;  %v3152_v55 = vpop.f32.mrb[127].mxu1 }
 0x2fc   : > { %3276 = vst [vmem:[%s5436_s13 + $0x3c8] sm:$0xff] %v3705_v34  ;;  %3278 = vst [vmem:[%s5436_s13 + $0x3d8] sm:$0xff] %v3769_v28  ;;  %v3707_v59 = vadd.f32 %v2766_v32, %v5426_v26  ;;  %v3771_v51 = vadd.f32 %v3152_v55, %v5430_v33 }
 0x2fd   : > { %3279 = vst [vmem:[%s5436_s13 + $0x3e0] sm:$0xff] %v3706_v35  ;;  %3281 = vst [vmem:[%s5436_s13 + $0x3f0] sm:$0xff] %v3770_v38 }
 0x2fe   : > { %3280 = vst [vmem:[%s5436_s13 + $0x3e8] sm:$0xff] %v3707_v59  ;;  %3282 = vst [vmem:[%s5436_s13 + $0x3f8] sm:$0xff] %v3771_v51 }
 0x2ff   : > { %4306 = shalt.err (!%p4303_p5)
}
 0x300   : > { %s4307_s9 = scalar_lea.hbm %s5687_s24, 16384  ;;  %s4311_s11 = scalar_lea.hbm %s5752_s5, 32768 }
 0x301   : > { %p4308_p6 = scmp.ne.s32.totalorder %s5687_s24, %s4307_s9  ;;  %p4312_p10 = scmp.lt.u32.totalorder %s5687_s24, %s5752_s5 }
 0x302   : > { %p4313_p11 = scmp.lt.u32.totalorder %s4311_s11, %s4307_s9  ;;  %p4315_p13 = scmp.lt.u32.totalorder %s4307_s9, %s5687_s24 }
 0x303   : > { %p4309_p7 = pnand %p4308_p6, %p4446_p4 }
 0x304   : > { %p4314_p12 = por %p4313_p11, %p4312_p10 }
 0x305   : > { %p4310_p9 = pneg %p4309_p7 }
 0x306   : > { %p4316_p0 = por %p4315_p13, %p4314_p12 }
 0x308   : > { %p4317_p1 = pnand %p4316_p0, %p4310_p9 }
 0x30a   : > { %4320 = shalt.err (!%p4317_p1)
}
 0x30b   : > { %s4374_s14 = smov 512   ;;  %s4375_s21 = smov 32  }
 0x30c   : > { %3900 = dma.vmem_to_hbm [thread:$0]  (%p4446_p4), %s5689_s15, 16384, %s5687_s24, %s5701_s25, %s4374_s14, %s4374_s14, %s4375_s21  }
 0x30d PF: > { %p3906_p2 = scmp.ge.s32.totalorder %s4371_s23, 2  ;;  %s3315_s16 = sand.u32 1, %s4351_s18  }
 0x30e   : > { %s3316_s27 = scalar_lea.sflag [#allocation4], %s3315_s16 }
 0x30f   : > { %p3903_p3 = pnand %p3906_p2, %p4453_p8 }
 0x311   : > { %4346 = dma.done.wait (!%p3903_p3), %s3316_s27, 16384  }
 0x312   : > { %4348 = vsyncadd (!%p3903_p3), %s3316_s27, 4294950912  ;;  %s18_s23 = sadd.s32 1, %s4371_s23   ;;  %s5755_s18 = smov %s4355_s19 }
 0x313   : > { %p15_p5 = scmp.ge.s32.totalorder %s18_s23, 4   ;;  %s5756_s19 = smov %s4359_s20 }
 0x314   : > { %s5757_s20 = smov %s4459_s6  ;;  %s5758_s21 = smov %s4367_s22 }
 0x315   : > { %s5759_s22 = smov %s5761_s26  ;;  %17 = sbr.rel (!%p15_p5) target bundleno = 4 (0x4), region = 85 }
 0x31c   :  { %3321 = vsyncpa [#allocation4], 1 }
 0x31d   :  { %3323 = vsyncpa [#allocation4 + $0x1], 1 }

</bundles_post_ra>
